<compile_context>
chip_gen: v7x
topology: tpu7x:2x2x1
jax: 0.10.0
libtpu: 0.0.40
codegen_flags: <defaults>
</compile_context>

<pallas_src>
import functools

import jax
import jax.numpy as jnp
import numpy as np
from jax.experimental import pallas as pl
from jax.experimental.pallas import tpu as pltpu

KS = 7          # spatial attention kernel size
PAD = KS // 2   # = 3


def _shift_lanes(v, s):
    """y[..., p] = v[..., (p + s) % size] (static circular lane shift).

    Positions where the circular wrap matters are always zeroed afterwards by
    the precomputed validity masks, so the wrap never leaks into the result.
    """
    if s == 0:
        return v
    return jnp.roll(v, -s, axis=v.ndim - 1)


def cbam_kernel(x_ref, w1t_ref, w2_ref, cmask_ref, rmask_ref, ws_ref, o_ref,
                pooled_ref, maps_ref, *, width):
    # x_ref     : (NB, C, HW)    VMEM  flattened, lane-dense activations
    # w1t_ref   : (C, Cr)   f32  VMEM  ChannelAttention.fc[0] weight, transposed
    # w2_ref    : (C, Cr)   f32  VMEM  ChannelAttention.fc[2] weight
    # cmask_ref : (KS, HW)  f32  VMEM  column-validity masks (one per dx)
    # rmask_ref : (KS, HW)  f32  VMEM  row-validity masks    (one per dy)
    # ws_ref    : (2, KS*KS) f32 SMEM  spatial conv weights (row0=avg, row1=max)
    # o_ref     : (NB, C, HW)    VMEM
    # pooled_ref: (C, 2*NB) f32  VMEM scratch [avg cols | max cols]
    # maps_ref  : (2*NB, HW) f32 VMEM scratch [avg rows ; max rows]
    NB, C, HW = x_ref.shape
    Cr = w1t_ref.shape[1]

    # ------------- pass 1: global avg / max pooling per image -----------------
    for b in range(NB):
        xb = x_ref[b].astype(jnp.float32)                              # (C, HW)
        pooled_ref[:, b:b + 1] = jnp.mean(xb, axis=1, keepdims=True)
        pooled_ref[:, NB + b:NB + b + 1] = jnp.max(xb, axis=1, keepdims=True)

    # ------------- shared channel MLP (both branches, all images at once) -----
    pooled = pooled_ref[...]                                           # (C, 2NB)
    w1t = w1t_ref[...]
    w2 = w2_ref[...]
    if Cr <= 16:
        # VPU path: Cr rank-1 updates; skips the MXU on this tiny matmul.
        z = None
        for j in range(Cr):
            hj = jnp.sum(pooled * w1t[:, j:j + 1], axis=0, keepdims=True)  # (1, 2NB)
            hj = jnp.maximum(hj, 0.0)
            zj = w2[:, j:j + 1] * hj                                       # (C, 2NB)
            z = zj if z is None else z + zj
    else:
        h = jax.lax.dot_general(w1t, pooled, (((0,), (0,)), ((), ())),
                                preferred_element_type=jnp.float32)       # (Cr, 2NB)
        h = jnp.maximum(h, 0.0)
        z = jnp.dot(w2, h, preferred_element_type=jnp.float32)            # (C, 2NB)
    ca = jax.nn.sigmoid(z[:, :NB] + z[:, NB:])                            # (C, NB)

    # ------- pass 2: channel-scaled activations -> packed spatial maps --------
    for b in range(NB):
        xc = x_ref[b].astype(jnp.float32) * ca[:, b:b + 1]                # (C, HW)
        maps_ref[b:b + 1, :] = jnp.mean(xc, axis=0, keepdims=True)
        maps_ref[NB + b:NB + b + 1, :] = jnp.max(xc, axis=0, keepdims=True)

    # ------------- spatial attention: 7x7 conv in the flattened layout --------
    packed = maps_ref[...]                                                # (2NB, HW)
    cmask = cmask_ref[...]                                                # (KS, HW)
    rmask = rmask_ref[...]                                                # (KS, HW)
    # Row selector: first NB sublanes hold the avg maps, last NB the max maps.
    is_avg = jax.lax.broadcasted_iota(jnp.int32, (2 * NB, 1), 0) < NB

    # Hoisted horizontal (dx) lane shifts, shared by every dy and both branches.
    # Note: masking by f32 multiply would turn 0*inf/NaN into NaN; inputs here
    # are finite, matching the reference zero-padding exactly.
    shifted = []
    for dx in range(KS):
        v = _shift_lanes(packed, dx - PAD)
        shifted.append(v * cmask[dx:dx + 1, :])

    acc_even = None
    acc_odd = None
    for dy in range(KS):
        t = None
        for dx in range(KS):
            k = dy * KS + dx
            # Per-sublane tap weight: ws[0,k] on avg rows, ws[1,k] on max rows.
            w_k = jnp.where(is_avg, ws_ref[0, k], ws_ref[1, k])           # (2NB, 1)
            p = shifted[dx] * w_k
            t = p if t is None else t + p
        t = _shift_lanes(t, (dy - PAD) * width)                           # vertical shift
        contrib = t * rmask[dy:dy + 1, :]                                 # zero-pad rows
        if dy % 2 == 0:
            acc_even = contrib if acc_even is None else acc_even + contrib
        else:
            acc_odd = contrib if acc_odd is None else acc_odd + contrib
    conv2 = acc_even + acc_odd                                            # (2NB, HW)
    sa = jax.nn.sigmoid(conv2[:NB, :] + conv2[NB:, :])                    # (NB, HW)

    # -------- pass 3: apply both attentions and store (interleaved) -----------
    for b in range(NB):
        xc = x_ref[b].astype(jnp.float32) * ca[:, b:b + 1]
        o_ref[b] = (xc * sa[b:b + 1, :]).astype(o_ref.dtype)


def cbam_forward(x, w1, w2, ws, *, nb=None):
    N, C, H, W = x.shape
    HW = H * W
    Cr = w1.shape[0]
    assert w1.shape == (Cr, C) and w2.shape == (C, Cr) and ws.shape == (1, 2, KS, KS)

    # Batch blocking: ~2 MiB input blocks (amortizes the ~600-cycle per-step
    # cost), grid >= 2 when possible; prefer an even grid (v7x megacore) and
    # nb % 4 == 0 (fills the conv's sublanes) as tiebreaks.
    if nb is None:
        bytes_per_img = C * HW * x.dtype.itemsize
        budget = max(1, (2 * 1024 * 1024) // bytes_per_img)
        cands = [d for d in range(1, N + 1)
                 if N % d == 0 and d <= budget and (N // d) >= min(2, N)]
        if not cands:
            cands = [1]
        nb = max(cands, key=lambda d: (d, (N // d) % 2 == 0, d % 4 == 0))
    assert N % nb == 0
    grid = (N // nb,)

    x_flat = x.reshape(N, C, HW)                                # lane-dense layout
    w1t = jnp.asarray(w1, jnp.float32).T                        # (C, Cr) cast hoisted
    w2f = jnp.asarray(w2, jnp.float32)                          # (C, Cr)
    ws_flat = jnp.asarray(ws, jnp.float32).reshape(2, KS * KS)  # scalars -> SMEM

    # Host-precomputed validity masks reproducing the 7x7 conv's zero padding in
    # the flattened (H*W) layout.  Static given (H, W); constant over the grid.
    pos = np.arange(HW)
    row = pos // W
    col = pos % W
    cmask = np.stack([((col + dx - PAD >= 0) & (col + dx - PAD < W)) for dx in range(KS)])
    rmask = np.stack([((row + dy - PAD >= 0) & (row + dy - PAD < H)) for dy in range(KS)])
    cmask = jnp.asarray(cmask.astype(np.float32))               # (KS, HW)
    rmask = jnp.asarray(rmask.astype(np.float32))               # (KS, HW)

    # Double-buffered in+out blocks + small constants; the explicit limit keeps
    # v5e (16 MiB default scoped VMEM) safe when blocks grow toward ~2 MiB and
    # stays well under the 32 MiB scoped / 64 MiB physical VMEM of v7x.
    block_bytes = nb * C * HW * x.dtype.itemsize
    vmem_limit = int(min(32 * 1024 * 1024, max(16 * 1024 * 1024, 6 * block_bytes)))

    out_flat = pl.pallas_call(
        functools.partial(cbam_kernel, width=W),
        out_shape=jax.ShapeDtypeStruct((N, C, HW), x.dtype),
        grid_spec=pltpu.PrefetchScalarGridSpec(
            num_scalar_prefetch=0,
            grid=grid,
            in_specs=[
                pl.BlockSpec((nb, C, HW), lambda b: (b, 0, 0)),
                pl.BlockSpec((C, Cr), lambda b: (0, 0)),
                pl.BlockSpec((C, Cr), lambda b: (0, 0)),
                pl.BlockSpec((KS, HW), lambda b: (0, 0)),
                pl.BlockSpec((KS, HW), lambda b: (0, 0)),
                pl.BlockSpec(memory_space=pltpu.MemorySpace.SMEM),
            ],
            out_specs=pl.BlockSpec((nb, C, HW), lambda b: (b, 0, 0)),
            scratch_shapes=[
                pltpu.VMEM((C, 2 * nb), jnp.float32),     # pooled avg/max columns
                pltpu.VMEM((2 * nb, HW), jnp.float32),    # packed avg/max spatial maps
            ],
        ),
        compiler_params=pltpu.CompilerParams(
            dimension_semantics=("parallel",),
            vmem_limit_bytes=vmem_limit),
    )(x_flat, w1t, w2f, cmask, rmask, ws_flat)
    return out_flat.reshape(N, C, H, W)


def cbam_reference(x, w1, w2, ws):
    """Pure-JAX reference matching the PyTorch module semantics."""
    # channel attention
    avg = jnp.mean(x, axis=(2, 3))        # (N, C)
    mx = jnp.max(x, axis=(2, 3))          # (N, C)

    def fc(v):
        h = jnp.maximum(v @ w1.T, 0.0)    # (N, Cr)
        return h @ w2.T                   # (N, C)

    ca = jax.nn.sigmoid(fc(avg) + fc(mx))[:, :, None, None]
    xc = x * ca
    # spatial attention
    avg_m = jnp.mean(xc, axis=1, keepdims=True)
    max_m = jnp.max(xc, axis=1, keepdims=True)
    cat = jnp.concatenate([avg_m, max_m], axis=1)      # (N, 2, H, W)
    conv = jax.lax.conv_general_dilated(
        cat, ws, window_strides=(1, 1), padding=((PAD, PAD), (PAD, PAD)),
        dimension_numbers=("NCHW", "OIHW", "NCHW"))
    sa = jax.nn.sigmoid(conv)
    return xc * sa


if __name__ == "__main__":
    N, C, H, W = 2, 32, 16, 16
    reduction = 16
    Cr = C // reduction                    # = 2

    key = jax.random.PRNGKey(0)
    kx, k1, k2, k3 = jax.random.split(key, 4)
    x = jax.random.normal(kx, (N, C, H, W), dtype=jnp.float32)
    w1 = jax.random.normal(k1, (Cr, C), dtype=jnp.float32) * 0.2          # fc[0] weight
    w2 = jax.random.normal(k2, (C, Cr), dtype=jnp.float32) * 0.2          # fc[2] weight
    ws = jax.random.normal(k3, (1, 2, KS, KS), dtype=jnp.float32) * 0.1   # spatial conv

    out = jax.block_until_ready(cbam_forward(x, w1, w2, ws))
    ref = jax.block_until_ready(cbam_reference(x, w1, w2, ws))
    assert out.shape == (N, C, H, W)
    err = float(jnp.max(jnp.abs(out - ref)))
    assert jnp.allclose(out, ref, atol=1e-4, rtol=1e-4), err

    print("KERNEL_OK")
</pallas_src>

<mosaic_0001>
module attributes {stable_mosaic.version = 11 : i64} {
  func.func @cbam_kernel(%arg0: i32, %arg1: memref<1x32x256xf32, #tpu.memory_space<vmem>>, %arg2: memref<32x2xf32, #tpu.memory_space<vmem>>, %arg3: memref<32x2xf32, #tpu.memory_space<vmem>>, %arg4: memref<7x256xf32, #tpu.memory_space<vmem>>, %arg5: memref<7x256xf32, #tpu.memory_space<vmem>>, %arg6: memref<2x49xf32, #tpu.memory_space<smem>>, %arg7: memref<1x32x256xf32, #tpu.memory_space<vmem>>, %arg8: memref<32x2xf32, #tpu.memory_space<vmem>>, %arg9: memref<2x256xf32, #tpu.memory_space<vmem>>) attributes {dimension_semantics = [#tpu.dimension_semantics<parallel>], iteration_bounds = array<i64: 2>, scalar_prefetch = 0 : i64, scratch_operands = 2 : i64, tpu.core_type = #tpu.core_type<tc>, window_params = [{transform_indices = @transform_0, window_bounds = array<i64: 1, 32, 256>}, {pipeline_mode = #tpu.pipeline_mode<synchronous>, transform_indices = @transform_1, window_bounds = array<i64: 32, 2>}, {pipeline_mode = #tpu.pipeline_mode<synchronous>, transform_indices = @transform_2, window_bounds = array<i64: 32, 2>}, {pipeline_mode = #tpu.pipeline_mode<synchronous>, transform_indices = @transform_3, window_bounds = array<i64: 7, 256>}, {pipeline_mode = #tpu.pipeline_mode<synchronous>, transform_indices = @transform_4, window_bounds = array<i64: 7, 256>}, {transform_indices = @transform_5, window_bounds = array<i64: 2, 49>}, {transform_indices = @transform_6, window_bounds = array<i64: 1, 32, 256>}]} {
    %c0 = arith.constant 0 : index
    %c0_0 = arith.constant 0 : index
    %c0_1 = arith.constant 0 : index
    %0 = vector.load %arg1[%c0, %c0_0, %c0_1] : memref<1x32x256xf32, #tpu.memory_space<vmem>>, vector<1x32x256xf32>
    %1 = vector.shape_cast %0 : vector<1x32x256xf32> to vector<32x256xf32>
    %cst = arith.constant dense<0.000000e+00> : vector<32xf32>
    %2 = vector.multi_reduction <add>, %1, %cst [1] : vector<32x256xf32> to vector<32xf32>
    %3 = vector.shape_cast %2 : vector<32xf32> to vector<32x1xf32>
    %cst_2 = arith.constant 2.560000e+02 : f32
    %4 = vector.broadcast %cst_2 : f32 to vector<32x1xf32>
    %5 = arith.divf %3, %4 : vector<32x1xf32>
    %c0_3 = arith.constant 0 : index
    %c0_4 = arith.constant 0 : index
    %6 = vector.load %arg8[%c0_3, %c0_4] : memref<32x2xf32, #tpu.memory_space<vmem>>, vector<32x1xf32>
    tpu.vector_store %arg8[%c0_3, %c0_4], %5 {strides = array<i32>} : memref<32x2xf32, #tpu.memory_space<vmem>>, vector<32x1xf32>,
    %cst_5 = arith.constant dense<0xFF800000> : vector<32xf32>
    %7 = vector.multi_reduction <maximumf>, %1, %cst_5 [1] : vector<32x256xf32> to vector<32xf32>
    %8 = vector.shape_cast %7 : vector<32xf32> to vector<32x1xf32>
    %c0_6 = arith.constant 0 : index
    %c1 = arith.constant 1 : index
    %9 = vector.load %arg8[%c0_6, %c1] : memref<32x2xf32, #tpu.memory_space<vmem>>, vector<32x1xf32>
    tpu.vector_store %arg8[%c0_6, %c1], %8 {strides = array<i32>} : memref<32x2xf32, #tpu.memory_space<vmem>>, vector<32x1xf32>,
    %c0_7 = arith.constant 0 : index
    %c0_8 = arith.constant 0 : index
    %10 = vector.load %arg8[%c0_7, %c0_8] : memref<32x2xf32, #tpu.memory_space<vmem>>, vector<32x2xf32>
    %c0_9 = arith.constant 0 : index
    %c0_10 = arith.constant 0 : index
    %11 = vector.load %arg2[%c0_9, %c0_10] : memref<32x2xf32, #tpu.memory_space<vmem>>, vector<32x2xf32>
    %c0_11 = arith.constant 0 : index
    %c0_12 = arith.constant 0 : index
    %12 = vector.load %arg3[%c0_11, %c0_12] : memref<32x2xf32, #tpu.memory_space<vmem>>, vector<32x2xf32>
    %13 = vector.extract_strided_slice %11 {offsets = [0, 0], sizes = [32, 1], strides = [1, 1]} : vector<32x2xf32> to vector<32x1xf32>
    %14 = vector.broadcast %13 : vector<32x1xf32> to vector<32x2xf32>
    %15 = arith.mulf %10, %14 : vector<32x2xf32>
    %cst_13 = arith.constant dense<0.000000e+00> : vector<2xf32>
    %16 = vector.multi_reduction <add>, %15, %cst_13 [0] : vector<32x2xf32> to vector<2xf32>
    %17 = vector.shape_cast %16 : vector<2xf32> to vector<1x2xf32>
    %cst_14 = arith.constant 0.000000e+00 : f32
    %18 = vector.broadcast %cst_14 : f32 to vector<1x2xf32>
    %19 = arith.maximumf %17, %18 : vector<1x2xf32>
    %20 = vector.extract_strided_slice %12 {offsets = [0, 0], sizes = [32, 1], strides = [1, 1]} : vector<32x2xf32> to vector<32x1xf32>
    %21 = vector.broadcast %20 : vector<32x1xf32> to vector<32x2xf32>
    %22 = vector.broadcast %19 : vector<1x2xf32> to vector<32x2xf32>
    %23 = arith.mulf %21, %22 : vector<32x2xf32>
    %24 = vector.extract_strided_slice %11 {offsets = [0, 1], sizes = [32, 1], strides = [1, 1]} : vector<32x2xf32> to vector<32x1xf32>
    %25 = vector.broadcast %24 : vector<32x1xf32> to vector<32x2xf32>
    %26 = arith.mulf %10, %25 : vector<32x2xf32>
    %cst_15 = arith.constant dense<0.000000e+00> : vector<2xf32>
    %27 = vector.multi_reduction <add>, %26, %cst_15 [0] : vector<32x2xf32> to vector<2xf32>
    %28 = vector.shape_cast %27 : vector<2xf32> to vector<1x2xf32>
    %cst_16 = arith.constant 0.000000e+00 : f32
    %29 = vector.broadcast %cst_16 : f32 to vector<1x2xf32>
    %30 = arith.maximumf %28, %29 : vector<1x2xf32>
    %31 = vector.extract_strided_slice %12 {offsets = [0, 1], sizes = [32, 1], strides = [1, 1]} : vector<32x2xf32> to vector<32x1xf32>
    %32 = vector.broadcast %31 : vector<32x1xf32> to vector<32x2xf32>
    %33 = vector.broadcast %30 : vector<1x2xf32> to vector<32x2xf32>
    %34 = arith.mulf %32, %33 : vector<32x2xf32>
    %35 = arith.addf %23, %34 : vector<32x2xf32>
    %36 = vector.extract_strided_slice %35 {offsets = [0, 0], sizes = [32, 1], strides = [1, 1]} : vector<32x2xf32> to vector<32x1xf32>
    %37 = vector.extract_strided_slice %35 {offsets = [0, 1], sizes = [32, 1], strides = [1, 1]} : vector<32x2xf32> to vector<32x1xf32>
    %38 = arith.addf %36, %37 : vector<32x1xf32>
    %39 = arith.negf %38 : vector<32x1xf32>
    %40 = math.exp %39 : vector<32x1xf32>
    %cst_17 = arith.constant 1.000000e+00 : f32
    %41 = vector.broadcast %cst_17 : f32 to vector<32x1xf32>
    %42 = arith.addf %41, %40 : vector<32x1xf32>
    %43 = arith.divf %41, %42 : vector<32x1xf32>
    %c0_18 = arith.constant 0 : index
    %c0_19 = arith.constant 0 : index
    %c0_20 = arith.constant 0 : index
    %44 = vector.load %arg1[%c0_18, %c0_19, %c0_20] : memref<1x32x256xf32, #tpu.memory_space<vmem>>, vector<1x32x256xf32>
    %45 = vector.shape_cast %44 : vector<1x32x256xf32> to vector<32x256xf32>
    %46 = vector.broadcast %43 : vector<32x1xf32> to vector<32x256xf32>
    %47 = arith.mulf %45, %46 : vector<32x256xf32>
    %cst_21 = arith.constant dense<0.000000e+00> : vector<256xf32>
    %48 = vector.multi_reduction <add>, %47, %cst_21 [0] : vector<32x256xf32> to vector<256xf32>
    %49 = vector.shape_cast %48 : vector<256xf32> to vector<1x256xf32>
    %cst_22 = arith.constant 3.200000e+01 : f32
    %50 = vector.broadcast %cst_22 : f32 to vector<1x256xf32>
    %51 = arith.divf %49, %50 : vector<1x256xf32>
    %c0_23 = arith.constant 0 : index
    %c0_24 = arith.constant 0 : index
    %52 = vector.load %arg9[%c0_23, %c0_24] : memref<2x256xf32, #tpu.memory_space<vmem>>, vector<1x256xf32>
    tpu.vector_store %arg9[%c0_23, %c0_24], %51 {strides = array<i32>} : memref<2x256xf32, #tpu.memory_space<vmem>>, vector<1x256xf32>,
    %cst_25 = arith.constant dense<0xFF800000> : vector<256xf32>
    %53 = vector.multi_reduction <maximumf>, %47, %cst_25 [0] : vector<32x256xf32> to vector<256xf32>
    %54 = vector.shape_cast %53 : vector<256xf32> to vector<1x256xf32>
    %c1_26 = arith.constant 1 : index
    %c0_27 = arith.constant 0 : index
    %55 = vector.load %arg9[%c1_26, %c0_27] : memref<2x256xf32, #tpu.memory_space<vmem>>, vector<1x256xf32>
    tpu.vector_store %arg9[%c1_26, %c0_27], %54 {strides = array<i32>} : memref<2x256xf32, #tpu.memory_space<vmem>>, vector<1x256xf32>,
    %c0_28 = arith.constant 0 : index
    %c0_29 = arith.constant 0 : index
    %56 = vector.load %arg9[%c0_28, %c0_29] : memref<2x256xf32, #tpu.memory_space<vmem>>, vector<2x256xf32>
    %c0_30 = arith.constant 0 : index
    %c0_31 = arith.constant 0 : index
    %57 = vector.load %arg4[%c0_30, %c0_31] : memref<7x256xf32, #tpu.memory_space<vmem>>, vector<7x256xf32>
    %c0_32 = arith.constant 0 : index
    %c0_33 = arith.constant 0 : index
    %58 = vector.load %arg5[%c0_32, %c0_33] : memref<7x256xf32, #tpu.memory_space<vmem>>, vector<7x256xf32>
    %59 = tpu.iota {dimensions = array<i32: 0>} : vector<2x1xi32>
    %c1_i32 = arith.constant 1 : i32
    %60 = vector.broadcast %c1_i32 : i32 to vector<2x1xi32>
    %61 = arith.cmpi slt, %59, %60 : vector<2x1xi32>
    %62 = vector.extract_strided_slice %56 {offsets = [0, 253], sizes = [2, 3], strides = [1, 1]} : vector<2x256xf32> to vector<2x3xf32>
    %63 = vector.extract_strided_slice %56 {offsets = [0, 0], sizes = [2, 253], strides = [1, 1]} : vector<2x256xf32> to vector<2x253xf32>
    %64 = tpu.concatenate %62, %63 in 1 : vector<2x3xf32>, vector<2x253xf32> -> vector<2x256xf32>
    %65 = vector.extract_strided_slice %57 {offsets = [0, 0], sizes = [1, 256], strides = [1, 1]} : vector<7x256xf32> to vector<1x256xf32>
    %66 = vector.broadcast %65 : vector<1x256xf32> to vector<2x256xf32>
    %67 = arith.mulf %64, %66 : vector<2x256xf32>
    %68 = vector.extract_strided_slice %56 {offsets = [0, 254], sizes = [2, 2], strides = [1, 1]} : vector<2x256xf32> to vector<2x2xf32>
    %69 = vector.extract_strided_slice %56 {offsets = [0, 0], sizes = [2, 254], strides = [1, 1]} : vector<2x256xf32> to vector<2x254xf32>
    %70 = tpu.concatenate %68, %69 in 1 : vector<2x2xf32>, vector<2x254xf32> -> vector<2x256xf32>
    %71 = vector.extract_strided_slice %57 {offsets = [1, 0], sizes = [1, 256], strides = [1, 1]} : vector<7x256xf32> to vector<1x256xf32>
    %72 = vector.broadcast %71 : vector<1x256xf32> to vector<2x256xf32>
    %73 = arith.mulf %70, %72 : vector<2x256xf32>
    %74 = vector.extract_strided_slice %56 {offsets = [0, 255], sizes = [2, 1], strides = [1, 1]} : vector<2x256xf32> to vector<2x1xf32>
    %75 = vector.extract_strided_slice %56 {offsets = [0, 0], sizes = [2, 255], strides = [1, 1]} : vector<2x256xf32> to vector<2x255xf32>
    %76 = tpu.concatenate %74, %75 in 1 : vector<2x1xf32>, vector<2x255xf32> -> vector<2x256xf32>
    %77 = vector.extract_strided_slice %57 {offsets = [2, 0], sizes = [1, 256], strides = [1, 1]} : vector<7x256xf32> to vector<1x256xf32>
    %78 = vector.broadcast %77 : vector<1x256xf32> to vector<2x256xf32>
    %79 = arith.mulf %76, %78 : vector<2x256xf32>
    %80 = vector.extract_strided_slice %57 {offsets = [3, 0], sizes = [1, 256], strides = [1, 1]} : vector<7x256xf32> to vector<1x256xf32>
    %81 = vector.broadcast %80 : vector<1x256xf32> to vector<2x256xf32>
    %82 = arith.mulf %56, %81 : vector<2x256xf32>
    %83 = vector.extract_strided_slice %56 {offsets = [0, 1], sizes = [2, 255], strides = [1, 1]} : vector<2x256xf32> to vector<2x255xf32>
    %84 = vector.extract_strided_slice %56 {offsets = [0, 0], sizes = [2, 1], strides = [1, 1]} : vector<2x256xf32> to vector<2x1xf32>
    %85 = tpu.concatenate %83, %84 in 1 : vector<2x255xf32>, vector<2x1xf32> -> vector<2x256xf32>
    %86 = vector.extract_strided_slice %57 {offsets = [4, 0], sizes = [1, 256], strides = [1, 1]} : vector<7x256xf32> to vector<1x256xf32>
    %87 = vector.broadcast %86 : vector<1x256xf32> to vector<2x256xf32>
    %88 = arith.mulf %85, %87 : vector<2x256xf32>
    %89 = vector.extract_strided_slice %56 {offsets = [0, 2], sizes = [2, 254], strides = [1, 1]} : vector<2x256xf32> to vector<2x254xf32>
    %90 = vector.extract_strided_slice %56 {offsets = [0, 0], sizes = [2, 2], strides = [1, 1]} : vector<2x256xf32> to vector<2x2xf32>
    %91 = tpu.concatenate %89, %90 in 1 : vector<2x254xf32>, vector<2x2xf32> -> vector<2x256xf32>
    %92 = vector.extract_strided_slice %57 {offsets = [5, 0], sizes = [1, 256], strides = [1, 1]} : vector<7x256xf32> to vector<1x256xf32>
    %93 = vector.broadcast %92 : vector<1x256xf32> to vector<2x256xf32>
    %94 = arith.mulf %91, %93 : vector<2x256xf32>
    %95 = vector.extract_strided_slice %56 {offsets = [0, 3], sizes = [2, 253], strides = [1, 1]} : vector<2x256xf32> to vector<2x253xf32>
    %96 = vector.extract_strided_slice %56 {offsets = [0, 0], sizes = [2, 3], strides = [1, 1]} : vector<2x256xf32> to vector<2x3xf32>
    %97 = tpu.concatenate %95, %96 in 1 : vector<2x253xf32>, vector<2x3xf32> -> vector<2x256xf32>
    %98 = vector.extract_strided_slice %57 {offsets = [6, 0], sizes = [1, 256], strides = [1, 1]} : vector<7x256xf32> to vector<1x256xf32>
    %99 = vector.broadcast %98 : vector<1x256xf32> to vector<2x256xf32>
    %100 = arith.mulf %97, %99 : vector<2x256xf32>
    %c0_34 = arith.constant 0 : index
    %c0_35 = arith.constant 0 : index
    %101 = memref.load %arg6[%c0_34, %c0_35] : memref<2x49xf32, #tpu.memory_space<smem>>
    %c1_36 = arith.constant 1 : index
    %c0_37 = arith.constant 0 : index
    %102 = memref.load %arg6[%c1_36, %c0_37] : memref<2x49xf32, #tpu.memory_space<smem>>
    %103 = vector.broadcast %101 : f32 to vector<2x1xf32>
    %104 = vector.broadcast %102 : f32 to vector<2x1xf32>
    %105 = arith.select %61, %103, %104 : vector<2x1xi1>, vector<2x1xf32>
    %106 = vector.broadcast %105 : vector<2x1xf32> to vector<2x256xf32>
    %107 = arith.mulf %67, %106 : vector<2x256xf32>
    %c0_38 = arith.constant 0 : index
    %c1_39 = arith.constant 1 : index
    %108 = memref.load %arg6[%c0_38, %c1_39] : memref<2x49xf32, #tpu.memory_space<smem>>
    %c1_40 = arith.constant 1 : index
    %c1_41 = arith.constant 1 : index
    %109 = memref.load %arg6[%c1_40, %c1_41] : memref<2x49xf32, #tpu.memory_space<smem>>
    %110 = vector.broadcast %108 : f32 to vector<2x1xf32>
    %111 = vector.broadcast %109 : f32 to vector<2x1xf32>
    %112 = arith.select %61, %110, %111 : vector<2x1xi1>, vector<2x1xf32>
    %113 = vector.broadcast %112 : vector<2x1xf32> to vector<2x256xf32>
    %114 = arith.mulf %73, %113 : vector<2x256xf32>
    %115 = arith.addf %107, %114 : vector<2x256xf32>
    %c0_42 = arith.constant 0 : index
    %c2 = arith.constant 2 : index
    %116 = memref.load %arg6[%c0_42, %c2] : memref<2x49xf32, #tpu.memory_space<smem>>
    %c1_43 = arith.constant 1 : index
    %c2_44 = arith.constant 2 : index
    %117 = memref.load %arg6[%c1_43, %c2_44] : memref<2x49xf32, #tpu.memory_space<smem>>
    %118 = vector.broadcast %116 : f32 to vector<2x1xf32>
    %119 = vector.broadcast %117 : f32 to vector<2x1xf32>
    %120 = arith.select %61, %118, %119 : vector<2x1xi1>, vector<2x1xf32>
    %121 = vector.broadcast %120 : vector<2x1xf32> to vector<2x256xf32>
    %122 = arith.mulf %79, %121 : vector<2x256xf32>
    %123 = arith.addf %115, %122 : vector<2x256xf32>
    %c0_45 = arith.constant 0 : index
    %c3 = arith.constant 3 : index
    %124 = memref.load %arg6[%c0_45, %c3] : memref<2x49xf32, #tpu.memory_space<smem>>
    %c1_46 = arith.constant 1 : index
    %c3_47 = arith.constant 3 : index
    %125 = memref.load %arg6[%c1_46, %c3_47] : memref<2x49xf32, #tpu.memory_space<smem>>
    %126 = vector.broadcast %124 : f32 to vector<2x1xf32>
    %127 = vector.broadcast %125 : f32 to vector<2x1xf32>
    %128 = arith.select %61, %126, %127 : vector<2x1xi1>, vector<2x1xf32>
    %129 = vector.broadcast %128 : vector<2x1xf32> to vector<2x256xf32>
    %130 = arith.mulf %82, %129 : vector<2x256xf32>
    %131 = arith.addf %123, %130 : vector<2x256xf32>
    %c0_48 = arith.constant 0 : index
    %c4 = arith.constant 4 : index
    %132 = memref.load %arg6[%c0_48, %c4] : memref<2x49xf32, #tpu.memory_space<smem>>
    %c1_49 = arith.constant 1 : index
    %c4_50 = arith.constant 4 : index
    %133 = memref.load %arg6[%c1_49, %c4_50] : memref<2x49xf32, #tpu.memory_space<smem>>
    %134 = vector.broadcast %132 : f32 to vector<2x1xf32>
    %135 = vector.broadcast %133 : f32 to vector<2x1xf32>
    %136 = arith.select %61, %134, %135 : vector<2x1xi1>, vector<2x1xf32>
    %137 = vector.broadcast %136 : vector<2x1xf32> to vector<2x256xf32>
    %138 = arith.mulf %88, %137 : vector<2x256xf32>
    %139 = arith.addf %131, %138 : vector<2x256xf32>
    %c0_51 = arith.constant 0 : index
    %c5 = arith.constant 5 : index
    %140 = memref.load %arg6[%c0_51, %c5] : memref<2x49xf32, #tpu.memory_space<smem>>
    %c1_52 = arith.constant 1 : index
    %c5_53 = arith.constant 5 : index
    %141 = memref.load %arg6[%c1_52, %c5_53] : memref<2x49xf32, #tpu.memory_space<smem>>
    %142 = vector.broadcast %140 : f32 to vector<2x1xf32>
    %143 = vector.broadcast %141 : f32 to vector<2x1xf32>
    %144 = arith.select %61, %142, %143 : vector<2x1xi1>, vector<2x1xf32>
    %145 = vector.broadcast %144 : vector<2x1xf32> to vector<2x256xf32>
    %146 = arith.mulf %94, %145 : vector<2x256xf32>
    %147 = arith.addf %139, %146 : vector<2x256xf32>
    %c0_54 = arith.constant 0 : index
    %c6 = arith.constant 6 : index
    %148 = memref.load %arg6[%c0_54, %c6] : memref<2x49xf32, #tpu.memory_space<smem>>
    %c1_55 = arith.constant 1 : index
    %c6_56 = arith.constant 6 : index
    %149 = memref.load %arg6[%c1_55, %c6_56] : memref<2x49xf32, #tpu.memory_space<smem>>
    %150 = vector.broadcast %148 : f32 to vector<2x1xf32>
    %151 = vector.broadcast %149 : f32 to vector<2x1xf32>
    %152 = arith.select %61, %150, %151 : vector<2x1xi1>, vector<2x1xf32>
    %153 = vector.broadcast %152 : vector<2x1xf32> to vector<2x256xf32>
    %154 = arith.mulf %100, %153 : vector<2x256xf32>
    %155 = arith.addf %147, %154 : vector<2x256xf32>
    %156 = vector.extract_strided_slice %155 {offsets = [0, 208], sizes = [2, 48], strides = [1, 1]} : vector<2x256xf32> to vector<2x48xf32>
    %157 = vector.extract_strided_slice %155 {offsets = [0, 0], sizes = [2, 208], strides = [1, 1]} : vector<2x256xf32> to vector<2x208xf32>
    %158 = tpu.concatenate %156, %157 in 1 : vector<2x48xf32>, vector<2x208xf32> -> vector<2x256xf32>
    %159 = vector.extract_strided_slice %58 {offsets = [0, 0], sizes = [1, 256], strides = [1, 1]} : vector<7x256xf32> to vector<1x256xf32>
    %160 = vector.broadcast %159 : vector<1x256xf32> to vector<2x256xf32>
    %161 = arith.mulf %158, %160 : vector<2x256xf32>
    %c0_57 = arith.constant 0 : index
    %c7 = arith.constant 7 : index
    %162 = memref.load %arg6[%c0_57, %c7] : memref<2x49xf32, #tpu.memory_space<smem>>
    %c1_58 = arith.constant 1 : index
    %c7_59 = arith.constant 7 : index
    %163 = memref.load %arg6[%c1_58, %c7_59] : memref<2x49xf32, #tpu.memory_space<smem>>
    %164 = vector.broadcast %162 : f32 to vector<2x1xf32>
    %165 = vector.broadcast %163 : f32 to vector<2x1xf32>
    %166 = arith.select %61, %164, %165 : vector<2x1xi1>, vector<2x1xf32>
    %167 = vector.broadcast %166 : vector<2x1xf32> to vector<2x256xf32>
    %168 = arith.mulf %67, %167 : vector<2x256xf32>
    %c0_60 = arith.constant 0 : index
    %c8 = arith.constant 8 : index
    %169 = memref.load %arg6[%c0_60, %c8] : memref<2x49xf32, #tpu.memory_space<smem>>
    %c1_61 = arith.constant 1 : index
    %c8_62 = arith.constant 8 : index
    %170 = memref.load %arg6[%c1_61, %c8_62] : memref<2x49xf32, #tpu.memory_space<smem>>
    %171 = vector.broadcast %169 : f32 to vector<2x1xf32>
    %172 = vector.broadcast %170 : f32 to vector<2x1xf32>
    %173 = arith.select %61, %171, %172 : vector<2x1xi1>, vector<2x1xf32>
    %174 = vector.broadcast %173 : vector<2x1xf32> to vector<2x256xf32>
    %175 = arith.mulf %73, %174 : vector<2x256xf32>
    %176 = arith.addf %168, %175 : vector<2x256xf32>
    %c0_63 = arith.constant 0 : index
    %c9 = arith.constant 9 : index
    %177 = memref.load %arg6[%c0_63, %c9] : memref<2x49xf32, #tpu.memory_space<smem>>
    %c1_64 = arith.constant 1 : index
    %c9_65 = arith.constant 9 : index
    %178 = memref.load %arg6[%c1_64, %c9_65] : memref<2x49xf32, #tpu.memory_space<smem>>
    %179 = vector.broadcast %177 : f32 to vector<2x1xf32>
    %180 = vector.broadcast %178 : f32 to vector<2x1xf32>
    %181 = arith.select %61, %179, %180 : vector<2x1xi1>, vector<2x1xf32>
    %182 = vector.broadcast %181 : vector<2x1xf32> to vector<2x256xf32>
    %183 = arith.mulf %79, %182 : vector<2x256xf32>
    %184 = arith.addf %176, %183 : vector<2x256xf32>
    %c0_66 = arith.constant 0 : index
    %c10 = arith.constant 10 : index
    %185 = memref.load %arg6[%c0_66, %c10] : memref<2x49xf32, #tpu.memory_space<smem>>
    %c1_67 = arith.constant 1 : index
    %c10_68 = arith.constant 10 : index
    %186 = memref.load %arg6[%c1_67, %c10_68] : memref<2x49xf32, #tpu.memory_space<smem>>
    %187 = vector.broadcast %185 : f32 to vector<2x1xf32>
    %188 = vector.broadcast %186 : f32 to vector<2x1xf32>
    %189 = arith.select %61, %187, %188 : vector<2x1xi1>, vector<2x1xf32>
    %190 = vector.broadcast %189 : vector<2x1xf32> to vector<2x256xf32>
    %191 = arith.mulf %82, %190 : vector<2x256xf32>
    %192 = arith.addf %184, %191 : vector<2x256xf32>
    %c0_69 = arith.constant 0 : index
    %c11 = arith.constant 11 : index
    %193 = memref.load %arg6[%c0_69, %c11] : memref<2x49xf32, #tpu.memory_space<smem>>
    %c1_70 = arith.constant 1 : index
    %c11_71 = arith.constant 11 : index
    %194 = memref.load %arg6[%c1_70, %c11_71] : memref<2x49xf32, #tpu.memory_space<smem>>
    %195 = vector.broadcast %193 : f32 to vector<2x1xf32>
    %196 = vector.broadcast %194 : f32 to vector<2x1xf32>
    %197 = arith.select %61, %195, %196 : vector<2x1xi1>, vector<2x1xf32>
    %198 = vector.broadcast %197 : vector<2x1xf32> to vector<2x256xf32>
    %199 = arith.mulf %88, %198 : vector<2x256xf32>
    %200 = arith.addf %192, %199 : vector<2x256xf32>
    %c0_72 = arith.constant 0 : index
    %c12 = arith.constant 12 : index
    %201 = memref.load %arg6[%c0_72, %c12] : memref<2x49xf32, #tpu.memory_space<smem>>
    %c1_73 = arith.constant 1 : index
    %c12_74 = arith.constant 12 : index
    %202 = memref.load %arg6[%c1_73, %c12_74] : memref<2x49xf32, #tpu.memory_space<smem>>
    %203 = vector.broadcast %201 : f32 to vector<2x1xf32>
    %204 = vector.broadcast %202 : f32 to vector<2x1xf32>
    %205 = arith.select %61, %203, %204 : vector<2x1xi1>, vector<2x1xf32>
    %206 = vector.broadcast %205 : vector<2x1xf32> to vector<2x256xf32>
    %207 = arith.mulf %94, %206 : vector<2x256xf32>
    %208 = arith.addf %200, %207 : vector<2x256xf32>
    %c0_75 = arith.constant 0 : index
    %c13 = arith.constant 13 : index
    %209 = memref.load %arg6[%c0_75, %c13] : memref<2x49xf32, #tpu.memory_space<smem>>
    %c1_76 = arith.constant 1 : index
    %c13_77 = arith.constant 13 : index
    %210 = memref.load %arg6[%c1_76, %c13_77] : memref<2x49xf32, #tpu.memory_space<smem>>
    %211 = vector.broadcast %209 : f32 to vector<2x1xf32>
    %212 = vector.broadcast %210 : f32 to vector<2x1xf32>
    %213 = arith.select %61, %211, %212 : vector<2x1xi1>, vector<2x1xf32>
    %214 = vector.broadcast %213 : vector<2x1xf32> to vector<2x256xf32>
    %215 = arith.mulf %100, %214 : vector<2x256xf32>
    %216 = arith.addf %208, %215 : vector<2x256xf32>
    %217 = vector.extract_strided_slice %216 {offsets = [0, 224], sizes = [2, 32], strides = [1, 1]} : vector<2x256xf32> to vector<2x32xf32>
    %218 = vector.extract_strided_slice %216 {offsets = [0, 0], sizes = [2, 224], strides = [1, 1]} : vector<2x256xf32> to vector<2x224xf32>
    %219 = tpu.concatenate %217, %218 in 1 : vector<2x32xf32>, vector<2x224xf32> -> vector<2x256xf32>
    %220 = vector.extract_strided_slice %58 {offsets = [1, 0], sizes = [1, 256], strides = [1, 1]} : vector<7x256xf32> to vector<1x256xf32>
    %221 = vector.broadcast %220 : vector<1x256xf32> to vector<2x256xf32>
    %222 = arith.mulf %219, %221 : vector<2x256xf32>
    %c0_78 = arith.constant 0 : index
    %c14 = arith.constant 14 : index
    %223 = memref.load %arg6[%c0_78, %c14] : memref<2x49xf32, #tpu.memory_space<smem>>
    %c1_79 = arith.constant 1 : index
    %c14_80 = arith.constant 14 : index
    %224 = memref.load %arg6[%c1_79, %c14_80] : memref<2x49xf32, #tpu.memory_space<smem>>
    %225 = vector.broadcast %223 : f32 to vector<2x1xf32>
    %226 = vector.broadcast %224 : f32 to vector<2x1xf32>
    %227 = arith.select %61, %225, %226 : vector<2x1xi1>, vector<2x1xf32>
    %228 = vector.broadcast %227 : vector<2x1xf32> to vector<2x256xf32>
    %229 = arith.mulf %67, %228 : vector<2x256xf32>
    %c0_81 = arith.constant 0 : index
    %c15 = arith.constant 15 : index
    %230 = memref.load %arg6[%c0_81, %c15] : memref<2x49xf32, #tpu.memory_space<smem>>
    %c1_82 = arith.constant 1 : index
    %c15_83 = arith.constant 15 : index
    %231 = memref.load %arg6[%c1_82, %c15_83] : memref<2x49xf32, #tpu.memory_space<smem>>
    %232 = vector.broadcast %230 : f32 to vector<2x1xf32>
    %233 = vector.broadcast %231 : f32 to vector<2x1xf32>
    %234 = arith.select %61, %232, %233 : vector<2x1xi1>, vector<2x1xf32>
    %235 = vector.broadcast %234 : vector<2x1xf32> to vector<2x256xf32>
    %236 = arith.mulf %73, %235 : vector<2x256xf32>
    %237 = arith.addf %229, %236 : vector<2x256xf32>
    %c0_84 = arith.constant 0 : index
    %c16 = arith.constant 16 : index
    %238 = memref.load %arg6[%c0_84, %c16] : memref<2x49xf32, #tpu.memory_space<smem>>
    %c1_85 = arith.constant 1 : index
    %c16_86 = arith.constant 16 : index
    %239 = memref.load %arg6[%c1_85, %c16_86] : memref<2x49xf32, #tpu.memory_space<smem>>
    %240 = vector.broadcast %238 : f32 to vector<2x1xf32>
    %241 = vector.broadcast %239 : f32 to vector<2x1xf32>
    %242 = arith.select %61, %240, %241 : vector<2x1xi1>, vector<2x1xf32>
    %243 = vector.broadcast %242 : vector<2x1xf32> to vector<2x256xf32>
    %244 = arith.mulf %79, %243 : vector<2x256xf32>
    %245 = arith.addf %237, %244 : vector<2x256xf32>
    %c0_87 = arith.constant 0 : index
    %c17 = arith.constant 17 : index
    %246 = memref.load %arg6[%c0_87, %c17] : memref<2x49xf32, #tpu.memory_space<smem>>
    %c1_88 = arith.constant 1 : index
    %c17_89 = arith.constant 17 : index
    %247 = memref.load %arg6[%c1_88, %c17_89] : memref<2x49xf32, #tpu.memory_space<smem>>
    %248 = vector.broadcast %246 : f32 to vector<2x1xf32>
    %249 = vector.broadcast %247 : f32 to vector<2x1xf32>
    %250 = arith.select %61, %248, %249 : vector<2x1xi1>, vector<2x1xf32>
    %251 = vector.broadcast %250 : vector<2x1xf32> to vector<2x256xf32>
    %252 = arith.mulf %82, %251 : vector<2x256xf32>
    %253 = arith.addf %245, %252 : vector<2x256xf32>
    %c0_90 = arith.constant 0 : index
    %c18 = arith.constant 18 : index
    %254 = memref.load %arg6[%c0_90, %c18] : memref<2x49xf32, #tpu.memory_space<smem>>
    %c1_91 = arith.constant 1 : index
    %c18_92 = arith.constant 18 : index
    %255 = memref.load %arg6[%c1_91, %c18_92] : memref<2x49xf32, #tpu.memory_space<smem>>
    %256 = vector.broadcast %254 : f32 to vector<2x1xf32>
    %257 = vector.broadcast %255 : f32 to vector<2x1xf32>
    %258 = arith.select %61, %256, %257 : vector<2x1xi1>, vector<2x1xf32>
    %259 = vector.broadcast %258 : vector<2x1xf32> to vector<2x256xf32>
    %260 = arith.mulf %88, %259 : vector<2x256xf32>
    %261 = arith.addf %253, %260 : vector<2x256xf32>
    %c0_93 = arith.constant 0 : index
    %c19 = arith.constant 19 : index
    %262 = memref.load %arg6[%c0_93, %c19] : memref<2x49xf32, #tpu.memory_space<smem>>
    %c1_94 = arith.constant 1 : index
    %c19_95 = arith.constant 19 : index
    %263 = memref.load %arg6[%c1_94, %c19_95] : memref<2x49xf32, #tpu.memory_space<smem>>
    %264 = vector.broadcast %262 : f32 to vector<2x1xf32>
    %265 = vector.broadcast %263 : f32 to vector<2x1xf32>
    %266 = arith.select %61, %264, %265 : vector<2x1xi1>, vector<2x1xf32>
    %267 = vector.broadcast %266 : vector<2x1xf32> to vector<2x256xf32>
    %268 = arith.mulf %94, %267 : vector<2x256xf32>
    %269 = arith.addf %261, %268 : vector<2x256xf32>
    %c0_96 = arith.constant 0 : index
    %c20 = arith.constant 20 : index
    %270 = memref.load %arg6[%c0_96, %c20] : memref<2x49xf32, #tpu.memory_space<smem>>
    %c1_97 = arith.constant 1 : index
    %c20_98 = arith.constant 20 : index
    %271 = memref.load %arg6[%c1_97, %c20_98] : memref<2x49xf32, #tpu.memory_space<smem>>
    %272 = vector.broadcast %270 : f32 to vector<2x1xf32>
    %273 = vector.broadcast %271 : f32 to vector<2x1xf32>
    %274 = arith.select %61, %272, %273 : vector<2x1xi1>, vector<2x1xf32>
    %275 = vector.broadcast %274 : vector<2x1xf32> to vector<2x256xf32>
    %276 = arith.mulf %100, %275 : vector<2x256xf32>
    %277 = arith.addf %269, %276 : vector<2x256xf32>
    %278 = vector.extract_strided_slice %277 {offsets = [0, 240], sizes = [2, 16], strides = [1, 1]} : vector<2x256xf32> to vector<2x16xf32>
    %279 = vector.extract_strided_slice %277 {offsets = [0, 0], sizes = [2, 240], strides = [1, 1]} : vector<2x256xf32> to vector<2x240xf32>
    %280 = tpu.concatenate %278, %279 in 1 : vector<2x16xf32>, vector<2x240xf32> -> vector<2x256xf32>
    %281 = vector.extract_strided_slice %58 {offsets = [2, 0], sizes = [1, 256], strides = [1, 1]} : vector<7x256xf32> to vector<1x256xf32>
    %282 = vector.broadcast %281 : vector<1x256xf32> to vector<2x256xf32>
    %283 = arith.mulf %280, %282 : vector<2x256xf32>
    %284 = arith.addf %161, %283 : vector<2x256xf32>
    %c0_99 = arith.constant 0 : index
    %c21 = arith.constant 21 : index
    %285 = memref.load %arg6[%c0_99, %c21] : memref<2x49xf32, #tpu.memory_space<smem>>
    %c1_100 = arith.constant 1 : index
    %c21_101 = arith.constant 21 : index
    %286 = memref.load %arg6[%c1_100, %c21_101] : memref<2x49xf32, #tpu.memory_space<smem>>
    %287 = vector.broadcast %285 : f32 to vector<2x1xf32>
    %288 = vector.broadcast %286 : f32 to vector<2x1xf32>
    %289 = arith.select %61, %287, %288 : vector<2x1xi1>, vector<2x1xf32>
    %290 = vector.broadcast %289 : vector<2x1xf32> to vector<2x256xf32>
    %291 = arith.mulf %67, %290 : vector<2x256xf32>
    %c0_102 = arith.constant 0 : index
    %c22 = arith.constant 22 : index
    %292 = memref.load %arg6[%c0_102, %c22] : memref<2x49xf32, #tpu.memory_space<smem>>
    %c1_103 = arith.constant 1 : index
    %c22_104 = arith.constant 22 : index
    %293 = memref.load %arg6[%c1_103, %c22_104] : memref<2x49xf32, #tpu.memory_space<smem>>
    %294 = vector.broadcast %292 : f32 to vector<2x1xf32>
    %295 = vector.broadcast %293 : f32 to vector<2x1xf32>
    %296 = arith.select %61, %294, %295 : vector<2x1xi1>, vector<2x1xf32>
    %297 = vector.broadcast %296 : vector<2x1xf32> to vector<2x256xf32>
    %298 = arith.mulf %73, %297 : vector<2x256xf32>
    %299 = arith.addf %291, %298 : vector<2x256xf32>
    %c0_105 = arith.constant 0 : index
    %c23 = arith.constant 23 : index
    %300 = memref.load %arg6[%c0_105, %c23] : memref<2x49xf32, #tpu.memory_space<smem>>
    %c1_106 = arith.constant 1 : index
    %c23_107 = arith.constant 23 : index
    %301 = memref.load %arg6[%c1_106, %c23_107] : memref<2x49xf32, #tpu.memory_space<smem>>
    %302 = vector.broadcast %300 : f32 to vector<2x1xf32>
    %303 = vector.broadcast %301 : f32 to vector<2x1xf32>
    %304 = arith.select %61, %302, %303 : vector<2x1xi1>, vector<2x1xf32>
    %305 = vector.broadcast %304 : vector<2x1xf32> to vector<2x256xf32>
    %306 = arith.mulf %79, %305 : vector<2x256xf32>
    %307 = arith.addf %299, %306 : vector<2x256xf32>
    %c0_108 = arith.constant 0 : index
    %c24 = arith.constant 24 : index
    %308 = memref.load %arg6[%c0_108, %c24] : memref<2x49xf32, #tpu.memory_space<smem>>
    %c1_109 = arith.constant 1 : index
    %c24_110 = arith.constant 24 : index
    %309 = memref.load %arg6[%c1_109, %c24_110] : memref<2x49xf32, #tpu.memory_space<smem>>
    %310 = vector.broadcast %308 : f32 to vector<2x1xf32>
    %311 = vector.broadcast %309 : f32 to vector<2x1xf32>
    %312 = arith.select %61, %310, %311 : vector<2x1xi1>, vector<2x1xf32>
    %313 = vector.broadcast %312 : vector<2x1xf32> to vector<2x256xf32>
    %314 = arith.mulf %82, %313 : vector<2x256xf32>
    %315 = arith.addf %307, %314 : vector<2x256xf32>
    %c0_111 = arith.constant 0 : index
    %c25 = arith.constant 25 : index
    %316 = memref.load %arg6[%c0_111, %c25] : memref<2x49xf32, #tpu.memory_space<smem>>
    %c1_112 = arith.constant 1 : index
    %c25_113 = arith.constant 25 : index
    %317 = memref.load %arg6[%c1_112, %c25_113] : memref<2x49xf32, #tpu.memory_space<smem>>
    %318 = vector.broadcast %316 : f32 to vector<2x1xf32>
    %319 = vector.broadcast %317 : f32 to vector<2x1xf32>
    %320 = arith.select %61, %318, %319 : vector<2x1xi1>, vector<2x1xf32>
    %321 = vector.broadcast %320 : vector<2x1xf32> to vector<2x256xf32>
    %322 = arith.mulf %88, %321 : vector<2x256xf32>
    %323 = arith.addf %315, %322 : vector<2x256xf32>
    %c0_114 = arith.constant 0 : index
    %c26 = arith.constant 26 : index
    %324 = memref.load %arg6[%c0_114, %c26] : memref<2x49xf32, #tpu.memory_space<smem>>
    %c1_115 = arith.constant 1 : index
    %c26_116 = arith.constant 26 : index
    %325 = memref.load %arg6[%c1_115, %c26_116] : memref<2x49xf32, #tpu.memory_space<smem>>
    %326 = vector.broadcast %324 : f32 to vector<2x1xf32>
    %327 = vector.broadcast %325 : f32 to vector<2x1xf32>
    %328 = arith.select %61, %326, %327 : vector<2x1xi1>, vector<2x1xf32>
    %329 = vector.broadcast %328 : vector<2x1xf32> to vector<2x256xf32>
    %330 = arith.mulf %94, %329 : vector<2x256xf32>
    %331 = arith.addf %323, %330 : vector<2x256xf32>
    %c0_117 = arith.constant 0 : index
    %c27 = arith.constant 27 : index
    %332 = memref.load %arg6[%c0_117, %c27] : memref<2x49xf32, #tpu.memory_space<smem>>
    %c1_118 = arith.constant 1 : index
    %c27_119 = arith.constant 27 : index
    %333 = memref.load %arg6[%c1_118, %c27_119] : memref<2x49xf32, #tpu.memory_space<smem>>
    %334 = vector.broadcast %332 : f32 to vector<2x1xf32>
    %335 = vector.broadcast %333 : f32 to vector<2x1xf32>
    %336 = arith.select %61, %334, %335 : vector<2x1xi1>, vector<2x1xf32>
    %337 = vector.broadcast %336 : vector<2x1xf32> to vector<2x256xf32>
    %338 = arith.mulf %100, %337 : vector<2x256xf32>
    %339 = arith.addf %331, %338 : vector<2x256xf32>
    %340 = vector.extract_strided_slice %58 {offsets = [3, 0], sizes = [1, 256], strides = [1, 1]} : vector<7x256xf32> to vector<1x256xf32>
    %341 = vector.broadcast %340 : vector<1x256xf32> to vector<2x256xf32>
    %342 = arith.mulf %339, %341 : vector<2x256xf32>
    %343 = arith.addf %222, %342 : vector<2x256xf32>
    %c0_120 = arith.constant 0 : index
    %c28 = arith.constant 28 : index
    %344 = memref.load %arg6[%c0_120, %c28] : memref<2x49xf32, #tpu.memory_space<smem>>
    %c1_121 = arith.constant 1 : index
    %c28_122 = arith.constant 28 : index
    %345 = memref.load %arg6[%c1_121, %c28_122] : memref<2x49xf32, #tpu.memory_space<smem>>
    %346 = vector.broadcast %344 : f32 to vector<2x1xf32>
    %347 = vector.broadcast %345 : f32 to vector<2x1xf32>
    %348 = arith.select %61, %346, %347 : vector<2x1xi1>, vector<2x1xf32>
    %349 = vector.broadcast %348 : vector<2x1xf32> to vector<2x256xf32>
    %350 = arith.mulf %67, %349 : vector<2x256xf32>
    %c0_123 = arith.constant 0 : index
    %c29 = arith.constant 29 : index
    %351 = memref.load %arg6[%c0_123, %c29] : memref<2x49xf32, #tpu.memory_space<smem>>
    %c1_124 = arith.constant 1 : index
    %c29_125 = arith.constant 29 : index
    %352 = memref.load %arg6[%c1_124, %c29_125] : memref<2x49xf32, #tpu.memory_space<smem>>
    %353 = vector.broadcast %351 : f32 to vector<2x1xf32>
    %354 = vector.broadcast %352 : f32 to vector<2x1xf32>
    %355 = arith.select %61, %353, %354 : vector<2x1xi1>, vector<2x1xf32>
    %356 = vector.broadcast %355 : vector<2x1xf32> to vector<2x256xf32>
    %357 = arith.mulf %73, %356 : vector<2x256xf32>
    %358 = arith.addf %350, %357 : vector<2x256xf32>
    %c0_126 = arith.constant 0 : index
    %c30 = arith.constant 30 : index
    %359 = memref.load %arg6[%c0_126, %c30] : memref<2x49xf32, #tpu.memory_space<smem>>
    %c1_127 = arith.constant 1 : index
    %c30_128 = arith.constant 30 : index
    %360 = memref.load %arg6[%c1_127, %c30_128] : memref<2x49xf32, #tpu.memory_space<smem>>
    %361 = vector.broadcast %359 : f32 to vector<2x1xf32>
    %362 = vector.broadcast %360 : f32 to vector<2x1xf32>
    %363 = arith.select %61, %361, %362 : vector<2x1xi1>, vector<2x1xf32>
    %364 = vector.broadcast %363 : vector<2x1xf32> to vector<2x256xf32>
    %365 = arith.mulf %79, %364 : vector<2x256xf32>
    %366 = arith.addf %358, %365 : vector<2x256xf32>
    %c0_129 = arith.constant 0 : index
    %c31 = arith.constant 31 : index
    %367 = memref.load %arg6[%c0_129, %c31] : memref<2x49xf32, #tpu.memory_space<smem>>
    %c1_130 = arith.constant 1 : index
    %c31_131 = arith.constant 31 : index
    %368 = memref.load %arg6[%c1_130, %c31_131] : memref<2x49xf32, #tpu.memory_space<smem>>
    %369 = vector.broadcast %367 : f32 to vector<2x1xf32>
    %370 = vector.broadcast %368 : f32 to vector<2x1xf32>
    %371 = arith.select %61, %369, %370 : vector<2x1xi1>, vector<2x1xf32>
    %372 = vector.broadcast %371 : vector<2x1xf32> to vector<2x256xf32>
    %373 = arith.mulf %82, %372 : vector<2x256xf32>
    %374 = arith.addf %366, %373 : vector<2x256xf32>
    %c0_132 = arith.constant 0 : index
    %c32 = arith.constant 32 : index
    %375 = memref.load %arg6[%c0_132, %c32] : memref<2x49xf32, #tpu.memory_space<smem>>
    %c1_133 = arith.constant 1 : index
    %c32_134 = arith.constant 32 : index
    %376 = memref.load %arg6[%c1_133, %c32_134] : memref<2x49xf32, #tpu.memory_space<smem>>
    %377 = vector.broadcast %375 : f32 to vector<2x1xf32>
    %378 = vector.broadcast %376 : f32 to vector<2x1xf32>
    %379 = arith.select %61, %377, %378 : vector<2x1xi1>, vector<2x1xf32>
    %380 = vector.broadcast %379 : vector<2x1xf32> to vector<2x256xf32>
    %381 = arith.mulf %88, %380 : vector<2x256xf32>
    %382 = arith.addf %374, %381 : vector<2x256xf32>
    %c0_135 = arith.constant 0 : index
    %c33 = arith.constant 33 : index
    %383 = memref.load %arg6[%c0_135, %c33] : memref<2x49xf32, #tpu.memory_space<smem>>
    %c1_136 = arith.constant 1 : index
    %c33_137 = arith.constant 33 : index
    %384 = memref.load %arg6[%c1_136, %c33_137] : memref<2x49xf32, #tpu.memory_space<smem>>
    %385 = vector.broadcast %383 : f32 to vector<2x1xf32>
    %386 = vector.broadcast %384 : f32 to vector<2x1xf32>
    %387 = arith.select %61, %385, %386 : vector<2x1xi1>, vector<2x1xf32>
    %388 = vector.broadcast %387 : vector<2x1xf32> to vector<2x256xf32>
    %389 = arith.mulf %94, %388 : vector<2x256xf32>
    %390 = arith.addf %382, %389 : vector<2x256xf32>
    %c0_138 = arith.constant 0 : index
    %c34 = arith.constant 34 : index
    %391 = memref.load %arg6[%c0_138, %c34] : memref<2x49xf32, #tpu.memory_space<smem>>
    %c1_139 = arith.constant 1 : index
    %c34_140 = arith.constant 34 : index
    %392 = memref.load %arg6[%c1_139, %c34_140] : memref<2x49xf32, #tpu.memory_space<smem>>
    %393 = vector.broadcast %391 : f32 to vector<2x1xf32>
    %394 = vector.broadcast %392 : f32 to vector<2x1xf32>
    %395 = arith.select %61, %393, %394 : vector<2x1xi1>, vector<2x1xf32>
    %396 = vector.broadcast %395 : vector<2x1xf32> to vector<2x256xf32>
    %397 = arith.mulf %100, %396 : vector<2x256xf32>
    %398 = arith.addf %390, %397 : vector<2x256xf32>
    %399 = vector.extract_strided_slice %398 {offsets = [0, 16], sizes = [2, 240], strides = [1, 1]} : vector<2x256xf32> to vector<2x240xf32>
    %400 = vector.extract_strided_slice %398 {offsets = [0, 0], sizes = [2, 16], strides = [1, 1]} : vector<2x256xf32> to vector<2x16xf32>
    %401 = tpu.concatenate %399, %400 in 1 : vector<2x240xf32>, vector<2x16xf32> -> vector<2x256xf32>
    %402 = vector.extract_strided_slice %58 {offsets = [4, 0], sizes = [1, 256], strides = [1, 1]} : vector<7x256xf32> to vector<1x256xf32>
    %403 = vector.broadcast %402 : vector<1x256xf32> to vector<2x256xf32>
    %404 = arith.mulf %401, %403 : vector<2x256xf32>
    %405 = arith.addf %284, %404 : vector<2x256xf32>
    %c0_141 = arith.constant 0 : index
    %c35 = arith.constant 35 : index
    %406 = memref.load %arg6[%c0_141, %c35] : memref<2x49xf32, #tpu.memory_space<smem>>
    %c1_142 = arith.constant 1 : index
    %c35_143 = arith.constant 35 : index
    %407 = memref.load %arg6[%c1_142, %c35_143] : memref<2x49xf32, #tpu.memory_space<smem>>
    %408 = vector.broadcast %406 : f32 to vector<2x1xf32>
    %409 = vector.broadcast %407 : f32 to vector<2x1xf32>
    %410 = arith.select %61, %408, %409 : vector<2x1xi1>, vector<2x1xf32>
    %411 = vector.broadcast %410 : vector<2x1xf32> to vector<2x256xf32>
    %412 = arith.mulf %67, %411 : vector<2x256xf32>
    %c0_144 = arith.constant 0 : index
    %c36 = arith.constant 36 : index
    %413 = memref.load %arg6[%c0_144, %c36] : memref<2x49xf32, #tpu.memory_space<smem>>
    %c1_145 = arith.constant 1 : index
    %c36_146 = arith.constant 36 : index
    %414 = memref.load %arg6[%c1_145, %c36_146] : memref<2x49xf32, #tpu.memory_space<smem>>
    %415 = vector.broadcast %413 : f32 to vector<2x1xf32>
    %416 = vector.broadcast %414 : f32 to vector<2x1xf32>
    %417 = arith.select %61, %415, %416 : vector<2x1xi1>, vector<2x1xf32>
    %418 = vector.broadcast %417 : vector<2x1xf32> to vector<2x256xf32>
    %419 = arith.mulf %73, %418 : vector<2x256xf32>
    %420 = arith.addf %412, %419 : vector<2x256xf32>
    %c0_147 = arith.constant 0 : index
    %c37 = arith.constant 37 : index
    %421 = memref.load %arg6[%c0_147, %c37] : memref<2x49xf32, #tpu.memory_space<smem>>
    %c1_148 = arith.constant 1 : index
    %c37_149 = arith.constant 37 : index
    %422 = memref.load %arg6[%c1_148, %c37_149] : memref<2x49xf32, #tpu.memory_space<smem>>
    %423 = vector.broadcast %421 : f32 to vector<2x1xf32>
    %424 = vector.broadcast %422 : f32 to vector<2x1xf32>
    %425 = arith.select %61, %423, %424 : vector<2x1xi1>, vector<2x1xf32>
    %426 = vector.broadcast %425 : vector<2x1xf32> to vector<2x256xf32>
    %427 = arith.mulf %79, %426 : vector<2x256xf32>
    %428 = arith.addf %420, %427 : vector<2x256xf32>
    %c0_150 = arith.constant 0 : index
    %c38 = arith.constant 38 : index
    %429 = memref.load %arg6[%c0_150, %c38] : memref<2x49xf32, #tpu.memory_space<smem>>
    %c1_151 = arith.constant 1 : index
    %c38_152 = arith.constant 38 : index
    %430 = memref.load %arg6[%c1_151, %c38_152] : memref<2x49xf32, #tpu.memory_space<smem>>
    %431 = vector.broadcast %429 : f32 to vector<2x1xf32>
    %432 = vector.broadcast %430 : f32 to vector<2x1xf32>
    %433 = arith.select %61, %431, %432 : vector<2x1xi1>, vector<2x1xf32>
    %434 = vector.broadcast %433 : vector<2x1xf32> to vector<2x256xf32>
    %435 = arith.mulf %82, %434 : vector<2x256xf32>
    %436 = arith.addf %428, %435 : vector<2x256xf32>
    %c0_153 = arith.constant 0 : index
    %c39 = arith.constant 39 : index
    %437 = memref.load %arg6[%c0_153, %c39] : memref<2x49xf32, #tpu.memory_space<smem>>
    %c1_154 = arith.constant 1 : index
    %c39_155 = arith.constant 39 : index
    %438 = memref.load %arg6[%c1_154, %c39_155] : memref<2x49xf32, #tpu.memory_space<smem>>
    %439 = vector.broadcast %437 : f32 to vector<2x1xf32>
    %440 = vector.broadcast %438 : f32 to vector<2x1xf32>
    %441 = arith.select %61, %439, %440 : vector<2x1xi1>, vector<2x1xf32>
    %442 = vector.broadcast %441 : vector<2x1xf32> to vector<2x256xf32>
    %443 = arith.mulf %88, %442 : vector<2x256xf32>
    %444 = arith.addf %436, %443 : vector<2x256xf32>
    %c0_156 = arith.constant 0 : index
    %c40 = arith.constant 40 : index
    %445 = memref.load %arg6[%c0_156, %c40] : memref<2x49xf32, #tpu.memory_space<smem>>
    %c1_157 = arith.constant 1 : index
    %c40_158 = arith.constant 40 : index
    %446 = memref.load %arg6[%c1_157, %c40_158] : memref<2x49xf32, #tpu.memory_space<smem>>
    %447 = vector.broadcast %445 : f32 to vector<2x1xf32>
    %448 = vector.broadcast %446 : f32 to vector<2x1xf32>
    %449 = arith.select %61, %447, %448 : vector<2x1xi1>, vector<2x1xf32>
    %450 = vector.broadcast %449 : vector<2x1xf32> to vector<2x256xf32>
    %451 = arith.mulf %94, %450 : vector<2x256xf32>
    %452 = arith.addf %444, %451 : vector<2x256xf32>
    %c0_159 = arith.constant 0 : index
    %c41 = arith.constant 41 : index
    %453 = memref.load %arg6[%c0_159, %c41] : memref<2x49xf32, #tpu.memory_space<smem>>
    %c1_160 = arith.constant 1 : index
    %c41_161 = arith.constant 41 : index
    %454 = memref.load %arg6[%c1_160, %c41_161] : memref<2x49xf32, #tpu.memory_space<smem>>
    %455 = vector.broadcast %453 : f32 to vector<2x1xf32>
    %456 = vector.broadcast %454 : f32 to vector<2x1xf32>
    %457 = arith.select %61, %455, %456 : vector<2x1xi1>, vector<2x1xf32>
    %458 = vector.broadcast %457 : vector<2x1xf32> to vector<2x256xf32>
    %459 = arith.mulf %100, %458 : vector<2x256xf32>
    %460 = arith.addf %452, %459 : vector<2x256xf32>
    %461 = vector.extract_strided_slice %460 {offsets = [0, 32], sizes = [2, 224], strides = [1, 1]} : vector<2x256xf32> to vector<2x224xf32>
    %462 = vector.extract_strided_slice %460 {offsets = [0, 0], sizes = [2, 32], strides = [1, 1]} : vector<2x256xf32> to vector<2x32xf32>
    %463 = tpu.concatenate %461, %462 in 1 : vector<2x224xf32>, vector<2x32xf32> -> vector<2x256xf32>
    %464 = vector.extract_strided_slice %58 {offsets = [5, 0], sizes = [1, 256], strides = [1, 1]} : vector<7x256xf32> to vector<1x256xf32>
    %465 = vector.broadcast %464 : vector<1x256xf32> to vector<2x256xf32>
    %466 = arith.mulf %463, %465 : vector<2x256xf32>
    %467 = arith.addf %343, %466 : vector<2x256xf32>
    %c0_162 = arith.constant 0 : index
    %c42 = arith.constant 42 : index
    %468 = memref.load %arg6[%c0_162, %c42] : memref<2x49xf32, #tpu.memory_space<smem>>
    %c1_163 = arith.constant 1 : index
    %c42_164 = arith.constant 42 : index
    %469 = memref.load %arg6[%c1_163, %c42_164] : memref<2x49xf32, #tpu.memory_space<smem>>
    %470 = vector.broadcast %468 : f32 to vector<2x1xf32>
    %471 = vector.broadcast %469 : f32 to vector<2x1xf32>
    %472 = arith.select %61, %470, %471 : vector<2x1xi1>, vector<2x1xf32>
    %473 = vector.broadcast %472 : vector<2x1xf32> to vector<2x256xf32>
    %474 = arith.mulf %67, %473 : vector<2x256xf32>
    %c0_165 = arith.constant 0 : index
    %c43 = arith.constant 43 : index
    %475 = memref.load %arg6[%c0_165, %c43] : memref<2x49xf32, #tpu.memory_space<smem>>
    %c1_166 = arith.constant 1 : index
    %c43_167 = arith.constant 43 : index
    %476 = memref.load %arg6[%c1_166, %c43_167] : memref<2x49xf32, #tpu.memory_space<smem>>
    %477 = vector.broadcast %475 : f32 to vector<2x1xf32>
    %478 = vector.broadcast %476 : f32 to vector<2x1xf32>
    %479 = arith.select %61, %477, %478 : vector<2x1xi1>, vector<2x1xf32>
    %480 = vector.broadcast %479 : vector<2x1xf32> to vector<2x256xf32>
    %481 = arith.mulf %73, %480 : vector<2x256xf32>
    %482 = arith.addf %474, %481 : vector<2x256xf32>
    %c0_168 = arith.constant 0 : index
    %c44 = arith.constant 44 : index
    %483 = memref.load %arg6[%c0_168, %c44] : memref<2x49xf32, #tpu.memory_space<smem>>
    %c1_169 = arith.constant 1 : index
    %c44_170 = arith.constant 44 : index
    %484 = memref.load %arg6[%c1_169, %c44_170] : memref<2x49xf32, #tpu.memory_space<smem>>
    %485 = vector.broadcast %483 : f32 to vector<2x1xf32>
    %486 = vector.broadcast %484 : f32 to vector<2x1xf32>
    %487 = arith.select %61, %485, %486 : vector<2x1xi1>, vector<2x1xf32>
    %488 = vector.broadcast %487 : vector<2x1xf32> to vector<2x256xf32>
    %489 = arith.mulf %79, %488 : vector<2x256xf32>
    %490 = arith.addf %482, %489 : vector<2x256xf32>
    %c0_171 = arith.constant 0 : index
    %c45 = arith.constant 45 : index
    %491 = memref.load %arg6[%c0_171, %c45] : memref<2x49xf32, #tpu.memory_space<smem>>
    %c1_172 = arith.constant 1 : index
    %c45_173 = arith.constant 45 : index
    %492 = memref.load %arg6[%c1_172, %c45_173] : memref<2x49xf32, #tpu.memory_space<smem>>
    %493 = vector.broadcast %491 : f32 to vector<2x1xf32>
    %494 = vector.broadcast %492 : f32 to vector<2x1xf32>
    %495 = arith.select %61, %493, %494 : vector<2x1xi1>, vector<2x1xf32>
    %496 = vector.broadcast %495 : vector<2x1xf32> to vector<2x256xf32>
    %497 = arith.mulf %82, %496 : vector<2x256xf32>
    %498 = arith.addf %490, %497 : vector<2x256xf32>
    %c0_174 = arith.constant 0 : index
    %c46 = arith.constant 46 : index
    %499 = memref.load %arg6[%c0_174, %c46] : memref<2x49xf32, #tpu.memory_space<smem>>
    %c1_175 = arith.constant 1 : index
    %c46_176 = arith.constant 46 : index
    %500 = memref.load %arg6[%c1_175, %c46_176] : memref<2x49xf32, #tpu.memory_space<smem>>
    %501 = vector.broadcast %499 : f32 to vector<2x1xf32>
    %502 = vector.broadcast %500 : f32 to vector<2x1xf32>
    %503 = arith.select %61, %501, %502 : vector<2x1xi1>, vector<2x1xf32>
    %504 = vector.broadcast %503 : vector<2x1xf32> to vector<2x256xf32>
    %505 = arith.mulf %88, %504 : vector<2x256xf32>
    %506 = arith.addf %498, %505 : vector<2x256xf32>
    %c0_177 = arith.constant 0 : index
    %c47 = arith.constant 47 : index
    %507 = memref.load %arg6[%c0_177, %c47] : memref<2x49xf32, #tpu.memory_space<smem>>
    %c1_178 = arith.constant 1 : index
    %c47_179 = arith.constant 47 : index
    %508 = memref.load %arg6[%c1_178, %c47_179] : memref<2x49xf32, #tpu.memory_space<smem>>
    %509 = vector.broadcast %507 : f32 to vector<2x1xf32>
    %510 = vector.broadcast %508 : f32 to vector<2x1xf32>
    %511 = arith.select %61, %509, %510 : vector<2x1xi1>, vector<2x1xf32>
    %512 = vector.broadcast %511 : vector<2x1xf32> to vector<2x256xf32>
    %513 = arith.mulf %94, %512 : vector<2x256xf32>
    %514 = arith.addf %506, %513 : vector<2x256xf32>
    %c0_180 = arith.constant 0 : index
    %c48 = arith.constant 48 : index
    %515 = memref.load %arg6[%c0_180, %c48] : memref<2x49xf32, #tpu.memory_space<smem>>
    %c1_181 = arith.constant 1 : index
    %c48_182 = arith.constant 48 : index
    %516 = memref.load %arg6[%c1_181, %c48_182] : memref<2x49xf32, #tpu.memory_space<smem>>
    %517 = vector.broadcast %515 : f32 to vector<2x1xf32>
    %518 = vector.broadcast %516 : f32 to vector<2x1xf32>
    %519 = arith.select %61, %517, %518 : vector<2x1xi1>, vector<2x1xf32>
    %520 = vector.broadcast %519 : vector<2x1xf32> to vector<2x256xf32>
    %521 = arith.mulf %100, %520 : vector<2x256xf32>
    %522 = arith.addf %514, %521 : vector<2x256xf32>
    %523 = vector.extract_strided_slice %522 {offsets = [0, 48], sizes = [2, 208], strides = [1, 1]} : vector<2x256xf32> to vector<2x208xf32>
    %524 = vector.extract_strided_slice %522 {offsets = [0, 0], sizes = [2, 48], strides = [1, 1]} : vector<2x256xf32> to vector<2x48xf32>
    %525 = tpu.concatenate %523, %524 in 1 : vector<2x208xf32>, vector<2x48xf32> -> vector<2x256xf32>
    %526 = vector.extract_strided_slice %58 {offsets = [6, 0], sizes = [1, 256], strides = [1, 1]} : vector<7x256xf32> to vector<1x256xf32>
    %527 = vector.broadcast %526 : vector<1x256xf32> to vector<2x256xf32>
    %528 = arith.mulf %525, %527 : vector<2x256xf32>
    %529 = arith.addf %405, %528 : vector<2x256xf32>
    %530 = arith.addf %529, %467 : vector<2x256xf32>
    %531 = vector.extract_strided_slice %530 {offsets = [0, 0], sizes = [1, 256], strides = [1, 1]} : vector<2x256xf32> to vector<1x256xf32>
    %532 = vector.extract_strided_slice %530 {offsets = [1, 0], sizes = [1, 256], strides = [1, 1]} : vector<2x256xf32> to vector<1x256xf32>
    %533 = arith.addf %531, %532 : vector<1x256xf32>
    %534 = arith.negf %533 : vector<1x256xf32>
    %535 = math.exp %534 : vector<1x256xf32>
    %cst_183 = arith.constant 1.000000e+00 : f32
    %536 = vector.broadcast %cst_183 : f32 to vector<1x256xf32>
    %537 = arith.addf %536, %535 : vector<1x256xf32>
    %538 = arith.divf %536, %537 : vector<1x256xf32>
    %c0_184 = arith.constant 0 : index
    %c0_185 = arith.constant 0 : index
    %c0_186 = arith.constant 0 : index
    %539 = vector.load %arg1[%c0_184, %c0_185, %c0_186] : memref<1x32x256xf32, #tpu.memory_space<vmem>>, vector<1x32x256xf32>
    %540 = vector.shape_cast %539 : vector<1x32x256xf32> to vector<32x256xf32>
    %541 = vector.broadcast %43 : vector<32x1xf32> to vector<32x256xf32>
    %542 = arith.mulf %540, %541 : vector<32x256xf32>
    %543 = vector.broadcast %538 : vector<1x256xf32> to vector<32x256xf32>
    %544 = arith.mulf %542, %543 : vector<32x256xf32>
    %c0_187 = arith.constant 0 : index
    %c0_188 = arith.constant 0 : index
    %c0_189 = arith.constant 0 : index
    %545 = vector.load %arg7[%c0_187, %c0_188, %c0_189] : memref<1x32x256xf32, #tpu.memory_space<vmem>>, vector<1x32x256xf32>
    %546 = vector.shape_cast %545 : vector<1x32x256xf32> to vector<32x256xf32>
    %547 = vector.shape_cast %544 : vector<32x256xf32> to vector<1x32x256xf32>
    tpu.vector_store %arg7[%c0_187, %c0_188, %c0_189], %547 {strides = array<i32>} : memref<1x32x256xf32, #tpu.memory_space<vmem>>, vector<1x32x256xf32>,
    return
  }
  func.func @transform_0(%arg0: i32) -> (i32, i32, i32) {
    %c0_i32 = arith.constant 0 : i32
    %c0_i32_0 = arith.constant 0 : i32
    %c0_i32_1 = arith.constant 0 : i32
    return %arg0, %c0_i32, %c0_i32_0 : i32, i32, i32
  }
  func.func @transform_1(%arg0: i32) -> (i32, i32) {
    %c0_i32 = arith.constant 0 : i32
    %c0_i32_0 = arith.constant 0 : i32
    %c0_i32_1 = arith.constant 0 : i32
    return %c0_i32, %c0_i32_0 : i32, i32
  }
  func.func @transform_2(%arg0: i32) -> (i32, i32) {
    %c0_i32 = arith.constant 0 : i32
    %c0_i32_0 = arith.constant 0 : i32
    %c0_i32_1 = arith.constant 0 : i32
    return %c0_i32, %c0_i32_0 : i32, i32
  }
  func.func @transform_3(%arg0: i32) -> (i32, i32) {
    %c0_i32 = arith.constant 0 : i32
    %c0_i32_0 = arith.constant 0 : i32
    %c0_i32_1 = arith.constant 0 : i32
    return %c0_i32, %c0_i32_0 : i32, i32
  }
  func.func @transform_4(%arg0: i32) -> (i32, i32) {
    %c0_i32 = arith.constant 0 : i32
    %c0_i32_0 = arith.constant 0 : i32
    %c0_i32_1 = arith.constant 0 : i32
    return %c0_i32, %c0_i32_0 : i32, i32
  }
  func.func @transform_5(%arg0: i32) -> (i32, i32) {
    %c0_i32 = arith.constant 0 : i32
    %c0_i32_0 = arith.constant 0 : i32
    %c0_i32_1 = arith.constant 0 : i32
    return %c0_i32, %c0_i32_0 : i32, i32
  }
  func.func @transform_6(%arg0: i32) -> (i32, i32, i32) {
    %c0_i32 = arith.constant 0 : i32
    %c0_i32_0 = arith.constant 0 : i32
    %c0_i32_1 = arith.constant 0 : i32
    return %arg0, %c0_i32, %c0_i32_0 : i32, i32, i32
  }
}

</mosaic_0001>

<bundles_post_ra>
// kernel: tpu_custom_call.1
= control target key start
LH: loop header
LB: loop body
LE: loop exit
PB: predicated region body
PF: predicated region fallthrough
CT: control target
= control target key end

     0   :  { %s3323_s0 = inlined_call_operand.hbm [shape: f32[2,32,256], index: 0, kind: input, shape index: {}]   ;;  %s3324_s1 = inlined_call_operand.vmem [shape: f32[32,2], index: 1, kind: input, shape index: {}]   ;;  %s3325_s2 = inlined_call_operand.vmem [shape: f32[32,2], index: 2, kind: input, shape index: {}]   ;;  %s3326_s3 = inlined_call_operand.vmem [shape: f32[7,256], index: 3, kind: input, shape index: {}]   ;;  %s3327_s4 = inlined_call_operand.vmem [shape: f32[7,256], index: 4, kind: input, shape index: {}]   ;;  %s3328_s5 = inlined_call_operand.vmem [shape: f32[2,49], index: 5, kind: input, shape index: {}]   ;;  %s3329_s6 = inlined_call_operand.hbm [shape: f32[2,32,256], index: 6, kind: output, shape index: {}]  }
   0x1   :  { %3387 = sst [smem:[#allocation48_spill]] %s3323_s0 }
   0x2   :  { %3388 = sst [smem:[#allocation49_spill]] %s3324_s1 }
   0x3   :  { %3389 = sst [smem:[#allocation50_spill]] %s3325_s2 }
   0x4   :  { %3390 = sst [smem:[#allocation51_spill]] %s3326_s3 }
   0x5   :  { %3391 = sst [smem:[#allocation52_spill]] %s3328_s5 }
   0x6   :  { %3392 = sst [smem:[#allocation53_spill]] %s3329_s6 }
   0x7   :  { %11 = vsyncpa [#allocation5], 0 }
   0x8   :  { %13 = vsyncpa [#allocation5 + $0x1], 0 }
   0x9   :  { %14 = vsyncpa [#allocation7], 0 }
   0xa   :  { %15 = vsyncpa [#allocation6], 0 }
   0xb   :  { %17 = vsyncpa [#allocation6 + $0x1], 0  ;;  %s2073_s21 = smov 0   ;;  %s2075_s22 = smov 0  }
   0xc   :  { %s2077_s23 = smov 0   ;;  %s2079_s24 = smov 0  }
   0xd LB: > { %3393 = sst [smem:[#allocation13_spill]] %s2001_s21  ;;  %s2094_s25 = sadd.s32 4294967295, %s2013_s24   ;;  %s2013_s24 = sphi %s2079_s24, %s3497_s24   ;;  %s2009_s23 = sphi %s2077_s23, %s3500_s23   ;;  %s2005_s22 = sphi %s2075_s22, %s3499_s22   ;;  %s2001_s21 = sphi %s2073_s21, %s3498_s21  }
   0xe   : > { %3394 = sst [smem:[#allocation14_spill]] %s2005_s22  ;;  %s1654_s26 = sadd.s32 4294967294, %s2013_s24  }
   0xf   : > { %3395 = sst [smem:[#allocation15_spill]] %s2009_s23  ;;  %s2098_s27 = sadd.s32 1, %s2013_s24  }
  0x10   : > { %3396 = sst [smem:[#allocation16_spill]] %s2013_s24  ;;  %s30_s28 = sadd.s32 1, %s2009_s23 }
  0x11   : > { %3397 = sst [smem:[#allocation17_spill]] %s2094_s25  ;;  %s27_s29 = ssub.s32 %s2013_s24, %s2098_s27 }
  0x12   : > { %3398 = sst [smem:[#allocation18_spill]] %s2098_s27  ;;  %p37_p0 = scmp.ne.s32.totalorder %s2009_s23, %s2005_s22 }
  0x13   : > { %p28_p1 = scmp.eq.s32.totalorder %s27_s29, 0  ;;  %p38_p2 = scmp.eq.s32.totalorder %s2013_s24, 0 }
  0x14   : > { %p43_p3 = scmp.ne.s32.totalorder %s2005_s22, %s2001_s21  ;;  %p3331_p4 = scmp.eq.s32.totalorder %s2094_s25, 0 }
  0x15   : > { %s2110_s30 = scalar_select %p28_p1, %s2009_s23, %s30_s28  }
  0x16   : > { %p2112_p5 = por %p38_p2, %p37_p0  ;;  %p2118_p6 = por %p3331_p4, %p43_p3 }
  0x17   : > { %3399 = sst [smem:[#allocation19_spill]] %s2110_s30  ;;  %p172_p7 = scmp.eq.s32.totalorder %s2094_s25, 1 }
  0x18   : > { %s3401_s8 = scalar_select %p2118_p6, 1, 0 }
  0x19   : > { %p178_p8 = scmp.eq.s32.totalorder %s1654_s26, 1  ;;  %p1655_p9 = scmp.ge.s32.totalorder %s2013_s24, 1 }
  0x1a   : > { %p185_p10 = scmp.lt.s32.totalorder %s2013_s24, 3  ;;  %p2125_p11 = por %p172_p7, %p37_p0 }
  0x1b   : > { %p2129_p12 = por %p178_p8, %p43_p3  ;;  %s3407_s5 = sld [smem:[#allocation52_spill]] }
  0x1c   : > { %s3402_s9 = scalar_select %p2125_p11, 1, 0 }
  0x1d   : > { %s3404_s10 = scalar_select %p2129_p12, 1, 0 }
  0x1e   : > { %3403 = sst [smem:[#allocation20_spill]] %s3402_s9  ;;  %p2133_p13 = pnand %p1655_p9, %p185_p10 }
  0x1f   : > { %3405 = sst [smem:[#allocation21_spill]] %s3404_s10  ;;  %p1796_p2 = scmp.lt.s32.totalorder %s2013_s24, 2 }
  0x20   : > { %p1783_p1 = pneg %p2133_p13  ;;  %s221_s16 = sand.u32 1, %s2009_s23  }
  0x21   : > { %s210_s14 = sshll.u32 %s3407_s5, 4  ;;  %p2153_p3 = pnand %p1796_p2, %p2112_p5  ;;  %s211_s14 = int_to_ptr.vmem [resolvable:$true] %s210_s14 }
  0x22   : > { %p2146_p7 = pnand %p1783_p1, %p3331_p4  ;;  %s1658_s18 = sshll.u32 %s221_s16, 6 }
  0x23   : > { %s1898_s19 = scalar_lea.vmem %s211_s14, 32  ;;  %p1906_p12 = scmp.lt.s32.totalorder %s211_s14, %s211_s14 }
  0x24   : > { %p1899_p8 = scmp.ne.s32.totalorder %s211_s14, %s1898_s19  ;;  %p1900_p9 = pneg %p2146_p7 }
  0x25   : > { %p1907_p11 = scmp.lt.s32.totalorder %s1898_s19, %s1898_s19 }
  0x26   : > { %p1901_p10 = pnand %p1900_p9, %p1899_p8 }
  0x27   : > { %p1908_p1 = por %p1907_p11, %p1906_p12 }
  0x28   : > { %p1902_p0 = pneg %p1901_p10 }
  0x2a   : > { %p1909_p4 = pnand %p1908_p1, %p1902_p0 }
  0x2c   : > { %1912 = shalt.err (!%p1909_p4)
}
  0x2d   : > { %s2015_s20 = smov [#allocation8]   ;;  %s1773_s26 = sshll.u32 %s2013_s24, 10 }
  0x2e   : > { %1786 = dma.vmem_to_smem (!%p2146_p7), %s211_s14, 32, %s2015_s20, [#allocation7]  }
  0x2f   : > { %s225_s28 = scalar_lea.vmem [#allocation4], %s1658_s18  ;;  %s3410_s0 = sld [smem:[#allocation48_spill]] }
  0x30   : > { %s232_s29 = sshll.u32 %s225_s28, 4  ;;  %s2169_s19 = scalar_lea.sflag [#allocation5], %s221_s16  ;;  %s2167_s29 = int_to_ptr.vmem [resolvable:$true] %s232_s29 }
  0x31   : > { %p1915_p5 = pneg %p2153_p3 }
  0x35   : > { %s2165_s13 = scalar_lea.hbm %s3410_s0, %s1773_s26  ;;  %s1918_s20 = scalar_lea.hbm %s3410_s0, 2048 }
  0x36   : > { %s1913_s15 = scalar_lea.hbm %s2165_s13, 1024  ;;  %p1919_p0 = scmp.lt.u32.totalorder %s2165_s13, %s3410_s0 }
  0x37   : > { %p1914_p4 = scmp.ne.s32.totalorder %s2165_s13, %s1913_s15  ;;  %p1920_p2 = scmp.lt.u32.totalorder %s1918_s20, %s1913_s15 }
  0x38   : > { %p1922_p8 = scmp.lt.u32.totalorder %s1913_s15, %s2165_s13 }
  0x39   : > { %p1916_p11 = pnand %p1915_p5, %p1914_p4  ;;  %p1921_p7 = por %p1920_p2, %p1919_p0 }
  0x3b   : > { %p1917_p12 = pneg %p1916_p11  ;;  %p1923_p9 = por %p1922_p8, %p1921_p7 }
  0x3d   : > { %p1924_p10 = pnand %p1923_p9, %p1917_p12 }
  0x3f   : > { %1927 = shalt.err (!%p1924_p10)
}
  0x40   : > { %s1928_s16 = scalar_lea.vmem %s2167_s29, 1024  ;;  %s2016_s7 = smov [#allocation4]  }
  0x41   : > { %p1929_p1 = scmp.ne.s32.totalorder %s2167_s29, %s1928_s16  ;;  %s1933_s12 = sshll.u32 %s2016_s7, 4  ;;  %s1934_s12 = int_to_ptr.vmem [resolvable:$false] %s1933_s12 }
  0x42   : > { %s1935_s14 = scalar_lea.vmem %s1934_s12, 2048  ;;  %p1936_p6 = scmp.lt.s32.totalorder %s2167_s29, %s1934_s12 }
  0x43   : > { %p1931_p4 = pnand %p1929_p1, %p1915_p5  ;;  %p1937_p0 = scmp.lt.s32.totalorder %s1935_s14, %s1928_s16 }
  0x45   : > { %p1932_p11 = pneg %p1931_p4  ;;  %p1938_p2 = por %p1937_p0, %p1936_p6 }
  0x47   : > { %p1939_p7 = pnand %p1938_p2, %p1932_p11 }
  0x49   : > { %1942 = shalt.err (!%p1939_p7)
}
  0x4a   : > { %s2017_s15 = smov 256   ;;  %s2018_s18 = smov 16  }
  0x4b   : > { %1790 = dma.hbm_to_vmem [thread:$0]  (!%p2153_p3), %s2165_s13, 1024, %s2167_s29, %s2169_s19, %s2017_s15, %s2017_s15, %s2018_s18  }
  0x4c   : > { %244 = sbr.rel (%p2133_p13) target bundleno = 967 (0x3c7), region = 44 }
  0x53   : > { %s2200_s20 = sand.u32 1, %s2005_s22   ;;  %p3413_p6 = scmp.ne.s32.totalorder %s3401_s8, 0 }
  0x54   : > { %3411 = sst [smem:[#allocation22_spill]] %s2200_s20  ;;  %s3333_s26 = sshll.u32 %s2200_s20, 6 }
  0x55   : > { %s247_s28 = scalar_lea.sflag [#allocation5], %s2200_s20  ;;  %s2206_s16 = scalar_lea.vmem [#allocation4], %s3333_s26 }
  0x56   : > { %3412 = sst [smem:[#allocation23_spill]] %s2206_s16 }
  0x57   : > { %1988 = dma.done.wait (%p3413_p6), %s247_s28, 1024  }
  0x58   : > { %1990 = vsyncadd (%p3413_p6), %s247_s28, 4294966272  ;;  %p3414_p3 = scmp.eq.s32.totalorder %s2094_s25, 0 }
  0x5a   : > { %1992 = dma.done.wait (%p3414_p3), [#allocation7], 32   ;;  %p3415_p13 = pmov %p3414_p3 }
  0x5c   : > { %1994 = vsyncadd (%p3415_p13), [#allocation7], 4294967264 }
  0x5d   : > { %259 = sfence }
  0x5e   : > { %v2217_v0 = vld [vmem:[%s2206_s16 + $0x20] sm:$0xff]  ;;  %v2220_v1 = vld [vmem:[%s2206_s16 + $0x28] sm:$0xff]  ;;  %v2231_v5 = vld [vmem:[%s2206_s16 + $0x10] sm:$0xff]  ;;  %v2019_v7 = vmov 0   ;;  %s3416_s1 = sld [smem:[#allocation49_spill]]  ;;  %v2020_v19 = vmov 1  }
  0x5f   : > { %v2223_v2 = vld [vmem:[%s2206_s16] sm:$0xff]  ;;  %v298_v3 = vadd.f32 %v2220_v1, %v2217_v0  ;;  %v2228_v4 = vld [vmem:[%s2206_s16 + $0x8] sm:$0xff]  ;;  %v2234_v6 = vld [vmem:[%s2206_s16 + $0x18] sm:$0xff]  ;;  %1853 = vset.pattern.permute.xlu1 %v2019_v7  ;;  %1852 = vset.pattern.permute.xlu0 %v2019_v7  ;;  %v320_v16 = vmax.f32 %v2217_v0, %v2220_v1  ;;  %s3417_s2 = sld [smem:[#allocation50_spill]]  ;;  %vm309_vm0 = vcmask 7168   ;;  %vm326_vm1 = vcmask 15368  }
  0x60   : > { %v292_v8 = vadd.f32 %v2228_v4, %v2223_v2  ;;  %v314_v9 = vmax.f32 %v2223_v2, %v2228_v4  ;;  %v295_v10 = vadd.f32 %v2234_v6, %v2231_v5  ;;  %v2243_v11 = vld [vmem:[%s2206_s16 + $0x30] sm:$0xff]  ;;  %v2246_v12 = vld [vmem:[%s2206_s16 + $0x38] sm:$0xff]  ;;  %v317_v14 = vmax.f32 %v2231_v5, %v2234_v6  ;;  %s2021_s13 = smov 127   ;;  %s2024_s19 = smov 3  }
  0x61   : > { %299 = vadd.xlane.f32.xlu1 %v298_v3  ;;  %v301_v13 = vadd.f32 %v2246_v12, %v2243_v11  ;;  %v323_v15 = vmax.f32 %v2243_v11, %v2246_v12  ;;  %vm367_vm2 = vcmask 15360   ;;  %s3423_s3 = sld [smem:[#allocation51_spill]]  ;;  %s1716_s18 = sld [smem:[#allocation8 + $0x18]]  ;;  %vm648_vm5 = vcmask 23552  }
  0x62   : > { %293 = vadd.xlane.f32.xlu0 %v292_v8  ;;  %s1717_s28 = sld [smem:[#allocation8 + $0x98]]  ;;  %s2025_s8 = smov 2   ;;  %vm725_vm6 = vcmask 1039360   ;;  %vm745_vm7 = vcmask 1031168   ;;  %vm765_vm8 = vcmask 1022976   ;;  %vm868_vm9 = vcmask 392192  }
  0x63   : > { %s2027_s11 = smov 1   ;;  %s2028_s17 = smov 126   ;;  %vm1072_vm10 = vcmask 130048   ;;  %vm970_vm11 = vcmask 261120   ;;  %vm1267_vm12 = vcmask 916480   ;;  %vm1371_vm13 = vcmask 785408  }
  0x64   : > { %v336_v17 = vld [vmem:[%s3416_s1 + $0x8] sm:$0xff]  ;;  %v335_v18 = vld [vmem:[%s3416_s1] sm:$0xff]  ;;  %v337_v21 = vld [vmem:[%s3416_s1 + $0x10] sm:$0xff]  ;;  %s2029_s29 = smov 125   ;;  %s2363_s7 = sld [smem:[#allocation8 + $0x11]]  ;;  %vm1475_vm14 = vcmask 654336  }
  0x65   : > { %315 = vmax.xlane.f32.xlu1 %v314_v9  ;;  %v340_v20 = vld [vmem:[%s3417_s2 + $0x8] sm:$0xff]  ;;  %v342_v22 = vld [vmem:[%s3417_s2 + $0x18] sm:$0xff]  ;;  %v339_v24 = vld [vmem:[%s3417_s2] sm:$0xff]  ;;  %s2365_s12 = sld [smem:[#allocation8 + $0x91]]  ;;  %s2367_s14 = sld [smem:[#allocation8 + $0xa]] }
  0x66   : > { %296 = vadd.xlane.f32.xlu0 %v295_v10  ;;  %v338_v23 = vld [vmem:[%s3416_s1 + $0x18] sm:$0xff]  ;;  %v341_v25 = vld [vmem:[%s3417_s2 + $0x10] sm:$0xff]  ;;  %s2369_s15 = sld [smem:[#allocation8 + $0x8a]]  ;;  %s2383_s26 = sld [smem:[#allocation8]] }
  0x67   : > { %s2385_s0 = sld [smem:[#allocation8 + $0x80]]  ;;  %s2387_s1 = sld [smem:[#allocation8 + $0xe]] }
  0x68   : > { %s2389_s2 = sld [smem:[#allocation8 + $0x8e]]  ;;  %s2393_s5 = sld [smem:[#allocation8 + $0x81]] }
  0x69   : > { %302 = vadd.xlane.f32.xlu1 %v301_v13  ;;  %s2395_s30 = sld [smem:[#allocation8 + $0xf]]  ;;  %s2411_s22 = sld [smem:[#allocation8 + $0x2]] }
  0x6a   : > { %318 = vmax.xlane.f32.xlu0 %v317_v14  ;;  %s2397_s23 = sld [smem:[#allocation8 + $0x8f]]  ;;  %s2413_s27 = sld [smem:[#allocation8 + $0x82]] }
  0x6b   : > { %s2506_s24 = sld [smem:[#allocation8 + $0x86]]  ;;  %s2512_s10 = sld [smem:[#allocation8 + $0x14]] }
  0x6c   : > { %s2532_s21 = sld [smem:[#allocation8 + $0x89]]  ;;  %s2555_s9 = sld [smem:[#allocation8 + $0x1d]] }
  0x6d   : > { %324 = vmax.xlane.f32.xlu1 %v323_v15  ;;  %s2610_s6 = sld [smem:[#allocation8 + $0xd]]  ;;  %s2612_s20 = sld [smem:[#allocation8 + $0x2a]] }
  0x6e   : > { %321 = vmax.xlane.f32.xlu0 %v320_v16  ;;  %s2618_s25 = sld [smem:[#allocation8 + $0x8d]]  ;;  %s2620_s16 = sld [smem:[#allocation8 + $0x1e]] }
  0x7e   : > { %350 = vperm.xlu1 %1853, %v336_v17  }
  0x82   : > { %1854 = vset.pattern.permute.xlu1 %v2020_v19 }
  0x83   : > { %407 = vperm.xlu1 %1854, %v335_v18  }
  0x84   : > { %345 = vperm.xlu0 %1852, %v335_v18  }
  0x87   : > { %411 = vperm.xlu1 %1854, %v336_v17  }
  0x88   : > { %1861 = vset.pattern.permute.xlu0 %v2020_v19 }
  0x89   : > { %445 = vperm.xlu0 %1861, %v340_v20  }
  0x8b   : > { %1855 = vset.pattern.permute.xlu1 %v2019_v7 }
  0x8c   : > { %355 = vperm.xlu1 %1855, %v337_v21  }
  0x8d   : > { %1862 = vset.pattern.permute.xlu0 %v2019_v7 }
  0x8e   : > { %389 = vperm.xlu0 %1862, %v340_v20  }
  0x90   : > { %1856 = vset.pattern.permute.xlu1 %v2020_v19 }
  0x91   : > { %415 = vperm.xlu1 %1856, %v337_v21  }
  0x92   : > { %399 = vperm.xlu0 %1862, %v342_v22  }
  0x95   : > { %1857 = vset.pattern.permute.xlu1 %v2019_v7 }
  0x96   : > { %360 = vperm.xlu1 %1857, %v338_v23  }
  0x9a   : > { %1858 = vset.pattern.permute.xlu1 %v2020_v19 }
  0x9b   : > { %419 = vperm.xlu1 %1858, %v338_v23  }
  0x9f   : > { %1859 = vset.pattern.permute.xlu1 %v2019_v7 }
  0xa0   : > { %384 = vperm.xlu1 %1859, %v339_v24  }
  0xa4   : > { %1860 = vset.pattern.permute.xlu1 %v2020_v19 }
  0xa5   : > { %441 = vperm.xlu1 %1860, %v339_v24  }
  0xa9   : > { %1863 = vset.pattern.permute.xlu1 %v2019_v7 }
  0xaa   : > { %394 = vperm.xlu1 %1863, %v341_v25  }
  0xae   : > { %1864 = vset.pattern.permute.xlu1 %v2020_v19 }
  0xaf   : > { %449 = vperm.xlu1 %1864, %v341_v25  }
  0xb3   : > { %453 = vperm.xlu1 %1864, %v342_v22  }
  0xb7   : > { %1865 = vset.pattern.permute.xlu1 %v2019_v7 }
  0xee   : > { %v300_v26 = vpop.xlane.xlu1 %299 }
  0xef   : > { %v307_v27 = vmul.f32 0.00390625, %v300_v26  ;;  %v294_v28 = vpop.xlane.xlu0 %293 }
  0xf0   : > { %v305_v29 = vmul.f32 0.00390625, %v294_v28 }
  0xf1   : > { %312 = vst.msk [vmem:[#allocation2 + $0x10] sm:$0xff] %vm309_vm0, %v307_v27 }
  0xf2   : > { %310 = vst.msk [vmem:[#allocation2] sm:$0xff] %vm309_vm0, %v305_v29  ;;  %v316_v30 = vpop.xlane.xlu1 %315 }
  0xf3   : > { %327 = vst.msk [vmem:[#allocation2] sm:$0xff] %vm326_vm1, %v316_v30  ;;  %v297_v31 = vpop.xlane.xlu0 %296 }
  0xf4   : > { %v306_v32 = vmul.f32 0.00390625, %v297_v31 }
  0xf6   : > { %311 = vst.msk [vmem:[#allocation2 + $0x8] sm:$0xff] %vm309_vm0, %v306_v32  ;;  %v303_v33 = vpop.xlane.xlu1 %302 }
  0xf7   : > { %v308_v34 = vmul.f32 0.00390625, %v303_v33  ;;  %v319_v35 = vpop.xlane.xlu0 %318 }
  0xf8   : > { %328 = vst.msk [vmem:[#allocation2 + $0x8] sm:$0xff] %vm326_vm1, %v319_v35 }
  0xf9   : > { %313 = vst.msk [vmem:[#allocation2 + $0x18] sm:$0xff] %vm309_vm0, %v308_v34 }
  0xfa   : > { %v325_v36 = vpop.xlane.xlu1 %324  ;;  %v331_v44 = vld [vmem:[#allocation2] sm:$0xff] }
  0xfb   : > { %330 = vst.msk [vmem:[#allocation2 + $0x18] sm:$0xff] %vm326_vm1, %v325_v36  ;;  %v322_v37 = vpop.xlane.xlu0 %321 }
  0xfc   : > { %329 = vst.msk [vmem:[#allocation2 + $0x10] sm:$0xff] %vm326_vm1, %v322_v37 }
  0xfe   : > { %v351_v38 = vpop.permute.xlu1 %350 }
  0xff   : > { %v332_v43 = vld [vmem:[#allocation2 + $0x8] sm:$0xff] }
 0x100   : > { %v364_v47 = vmul.f32 %v351_v38, %v332_v43 }
 0x102   : > { %v408_v39 = vpop.permute.xlu1 %407  ;;  %v369_v52 = vsel %vm367_vm2, %v364_v47, 0.0  ;;  %v334_v57 = vld [vmem:[#allocation2 + $0x18] sm:$0xff] }
 0x103   : > { %v346_v41 = vpop.permute.xlu0 %345  ;;  %v333_v45 = vld [vmem:[#allocation2 + $0x10] sm:$0xff]  ;;  %v422_v54 = vmul.f32 %v408_v39, %v331_v44 }
 0x104   : > { %v363_v46 = vmul.f32 %v346_v41, %v331_v44 }
 0x105   : > { %v426_v63 = vsel %vm367_vm2, %v422_v54, 0.0 }
 0x106   : > { %v412_v40 = vpop.permute.xlu1 %411  ;;  %v368_v50 = vsel %vm367_vm2, %v363_v46, 0.0 }
 0x107   : > { %v423_v51 = vmul.f32 %v412_v40, %v332_v43  ;;  %v370_v55 = vadd.f32 %v369_v52, %v368_v50 }
 0x108   : > { %v446_v25 = vpop.permute.xlu0 %445 }
 0x109   : > { %v427_v60 = vsel %vm367_vm2, %v423_v51, 0.0 }
 0x10a   : > { %v428_v8 = vadd.f32 %v427_v60, %v426_v63 }
 0x10b   : > { %v356_v42 = vpop.permute.xlu1 %355 }
 0x10c   : > { %v365_v48 = vmul.f32 %v356_v42, %v333_v45 }
 0x10d   : > { %v390_v33 = vpop.permute.xlu0 %389 }
 0x10e   : > { %v371_v53 = vsel %vm367_vm2, %v365_v48, 0.0 }
 0x10f   : > { %v372_v61 = vadd.f32 %v371_v53, %v370_v55 }
 0x110   : > { %v416_v49 = vpop.permute.xlu1 %415 }
 0x111   : > { %v424_v56 = vmul.f32 %v416_v49, %v333_v45  ;;  %v400_v42 = vpop.permute.xlu0 %399 }
 0x113   : > { %v429_v3 = vsel %vm367_vm2, %v424_v56, 0.0 }
 0x114   : > { %v430_v14 = vadd.f32 %v429_v3, %v428_v8 }
 0x115   : > { %v361_v58 = vpop.permute.xlu1 %360 }
 0x116   : > { %v366_v59 = vmul.f32 %v361_v58, %v334_v57 }
 0x118   : > { %v373_v62 = vsel %vm367_vm2, %v366_v59, 0.0 }
 0x119   : > { %v374_v7 = vadd.f32 %v373_v62, %v372_v61 }
 0x11a   : > { %v420_v9 = vpop.permute.xlu1 %419 }
 0x11b   : > { %v375_v10 = vrot.slane %v374_v7, 4  ;;  %v425_v13 = vmul.f32 %v420_v9, %v334_v57 }
 0x11d   : > { %v376_v15 = vadd.f32 %v375_v10, %v374_v7  ;;  %v431_v16 = vsel %vm367_vm2, %v425_v13, 0.0 }
 0x11e   : > { %v432_v17 = vadd.f32 %v431_v16, %v430_v14 }
 0x11f   : > { %v377_v18 = vrot.slane %v376_v15, 2  ;;  %v385_v19 = vpop.permute.xlu1 %384 }
 0x120   : > { %v433_v20 = vrot.slane %v432_v17, 4 }
 0x121   : > { %v378_v21 = vadd.f32 %v377_v18, %v376_v15 }
 0x122   : > { %v434_v22 = vadd.f32 %v433_v20, %v432_v17 }
 0x123   : > { %v379_v23 = vrot.slane %v378_v21, 1 }
 0x124   : > { %v435_v24 = vrot.slane %v434_v22, 2  ;;  %v442_v26 = vpop.permute.xlu1 %441 }
 0x125   : > { %v380_v28 = vadd.f32 %v379_v23, %v378_v21 }
 0x126   : > { %v436_v27 = vadd.f32 %v435_v24, %v434_v22 }
 0x127   : > { %v381_v31 = vmax.f32 %v380_v28, 0.0 }
 0x128   : > { %v437_v29 = vrot.slane %v436_v27, 1 }
 0x129   : > { %v395_v30 = vpop.permute.xlu1 %394  ;;  %v402_v35 = vmul.f32 %v385_v19, %v381_v31  ;;  %v403_v37 = vmul.f32 %v390_v33, %v381_v31  ;;  %v405_v46 = vmul.f32 %v400_v42, %v381_v31 }
 0x12a   : > { %v438_v32 = vadd.f32 %v437_v29, %v436_v27  ;;  %v404_v44 = vmul.f32 %v395_v30, %v381_v31 }
 0x12c   : > { %v439_v34 = vmax.f32 %v438_v32, 0.0 }
 0x12e   : > { %v457_v36 = vmul.f32 %v446_v25, %v439_v34  ;;  %v456_v38 = vmul.f32 %v442_v26, %v439_v34  ;;  %v450_v39 = vpop.permute.xlu1 %449 }
 0x12f   : > { %v458_v43 = vmul.f32 %v450_v39, %v439_v34 }
 0x130   : > { %v461_v40 = vadd.f32 %v457_v36, %v403_v37  ;;  %v460_v41 = vadd.f32 %v456_v38, %v402_v35 }
 0x131   : > { %v462_v48 = vadd.f32 %v458_v43, %v404_v44  ;;  %v571_v43 = vlaneseq }
 0x132   : > { %v454_v45 = vpop.permute.xlu1 %453  ;;  %468 = vrot.lane.b32.xlu1 %v460_v41, %s2021_s13  ;;  %470 = vrot.lane.b32.xlu0 %v461_v40, %s2021_s13 }
 0x133   : > { %v459_v47 = vmul.f32 %v454_v45, %v439_v34  ;;  %vm585_vm3 = vcmp.lt.s32.totalorder %v571_v43, 256 }
 0x135   : > { %v463_v49 = vadd.f32 %v459_v47, %v405_v46 }
 0x136   : > { %472 = vrot.lane.b32.xlu1 %v462_v48, %s2021_s13 }
 0x137   : > { %474 = vrot.lane.b32.xlu0 %v463_v49, %s2021_s13 }
 0x1a4   : > { %v469_v50 = vpop.permute.xlu1 %468  ;;  %v471_v51 = vpop.permute.xlu0 %470 }
 0x1a5   : > { %v480_v52 = vadd.f32 %v469_v50, %v460_v41  ;;  %v481_v53 = vadd.f32 %v471_v51, %v461_v40 }
 0x1a7   : > { %v1665_v54 = vmul.f32 -1.442695, %v480_v52  ;;  %v1666_v55 = vmul.f32 -1.442695, %v481_v53  ;;  %v2324_v52 = vshrl.u32 %v571_v43, 7 }
 0x1a8   : > { %v473_v56 = vpop.permute.xlu1 %472 }
 0x1a9   : > { %1866 = vpow2.f32 %v1665_v54  ;;  %v482_v57 = vadd.f32 %v473_v56, %v462_v48  ;;  %v475_v58 = vpop.permute.xlu0 %474  ;;  %3422 = vst [vmem:[#allocation28_spill] sm:$0xff] %v2324_v52  ;;  %vm633_vm4 = vcmp.lt.s32.totalorder %v2324_v52, 1 }
 0x1aa   : > { %1868 = vpow2.f32 %v1666_v55  ;;  %v483_v59 = vadd.f32 %v475_v58, %v463_v49 }
 0x1ab   : > { %v1667_v60 = vmul.f32 -1.442695, %v482_v57 }
 0x1ac   : > { %v1668_v61 = vmul.f32 -1.442695, %v483_v59 }
 0x1ad   : > { %1870 = vpow2.f32 %v1667_v60 }
 0x1ae   : > { %1872 = vpow2.f32 %v1668_v61 }
 0x1b3   : > { %v1867_v62 = vpop.eup %1866 }
 0x1b4   : > { %v1869_v63 = vpop.eup %1868  ;;  %v496_v3 = vadd.f32 1.0, %v1867_v62 }
 0x1b5   : > { %v497_v7 = vadd.f32 1.0, %v1869_v63 }
 0x1b6   : > { %1874 = vrcp.f32 %v496_v3 }
 0x1b7   : > { %v1871_v8 = vpop.eup %1870  ;;  %1876 = vrcp.f32 %v497_v7 }
 0x1b8   : > { %v1873_v9 = vpop.eup %1872  ;;  %v498_v10 = vadd.f32 1.0, %v1871_v8 }
 0x1b9   : > { %v499_v13 = vadd.f32 1.0, %v1873_v9 }
 0x1ba   : > { %1878 = vrcp.f32 %v498_v10 }
 0x1bb   : > { %1880 = vrcp.f32 %v499_v13 }
 0x1c0   : > { %v1875_v14 = vpop.eup %1874 }
 0x1c1   : > { %v1877_v15 = vpop.eup %1876  ;;  %518 = vperm.xlu1 %1865, %v1875_v14  }
 0x1c2   : > { %523 = vperm.xlu0 %1862, %v1877_v15  }
 0x1c4   : > { %v1879_v16 = vpop.eup %1878 }
 0x1c5   : > { %v1881_v17 = vpop.eup %1880  ;;  %528 = vperm.xlu1 %1865, %v1879_v16   ;;  %v2023_v16 = vmov 1983009808  }
 0x1c6   : > { %533 = vperm.xlu0 %1862, %v1881_v17   ;;  %v636_v17 = vunpack.c.l.s4 %v2023_v16  ;;  %v2492_v16 = vsub.s32 2, %v2324_v52 }
 0x1c8   : > { %3428 = vst [vmem:[#allocation33_spill] sm:$0xff] %v2492_v16 }
 0x240   : > { %v2300_v18 = vpop.permute.xlu1 %518 }
 0x241   : > { %3418 = vst [vmem:[#allocation24_spill] sm:$0xff] %v2300_v18  ;;  %v536_v19 = vmul.f32 %v2300_v18, %v2223_v2  ;;  %v537_v20 = vmul.f32 %v2300_v18, %v2228_v4  ;;  %v2306_v21 = vpop.permute.xlu0 %523 }
 0x242   : > { %3419 = vst [vmem:[#allocation25_spill] sm:$0xff] %v2306_v21  ;;  %v538_v22 = vmul.f32 %v2306_v21, %v2231_v5  ;;  %v539_v23 = vmul.f32 %v2306_v21, %v2234_v6 }
 0x244   : > { %v2312_v24 = vpop.permute.xlu1 %528  ;;  %v544_v25 = vadd.f32 %v538_v22, %v536_v19  ;;  %v553_v26 = vadd.f32 %v539_v23, %v537_v20 }
 0x245   : > { %3420 = vst [vmem:[#allocation26_spill] sm:$0xff] %v2312_v24  ;;  %v540_v27 = vmul.f32 %v2312_v24, %v2217_v0  ;;  %v541_v2 = vmul.f32 %v2312_v24, %v2220_v1  ;;  %v2318_v28 = vpop.permute.xlu0 %533 }
 0x246   : > { %3421 = vst [vmem:[#allocation27_spill] sm:$0xff] %v2318_v28  ;;  %v542_v4 = vmul.f32 %v2318_v28, %v2243_v11  ;;  %v543_v5 = vmul.f32 %v2318_v28, %v2246_v12  ;;  %v2022_v11 = vmov 1966171168  }
 0x247   : > { %v545_v29 = vadd.f32 %v544_v25, %v540_v27  ;;  %v554_v6 = vadd.f32 %v553_v26, %v541_v2  ;;  %v588_v30 = vmax.f32 %v536_v19, %v540_v27  ;;  %v597_v31 = vmax.f32 %v537_v20, %v541_v2  ;;  %v2335_v25 = vld [vmem:[%s3423_s3] sm:$0x7f]  ;;  %v2343_v27 = vld [vmem:[%s3423_s3 + $0x8] sm:$0x7f]  ;;  %s2391_s3 = sld [smem:[#allocation8 + $0x1]] }
 0x248   : > { %v589_v32 = vmax.f32 %v538_v22, %v542_v4  ;;  %v598_v33 = vmax.f32 %v539_v23, %v543_v5  ;;  %v569_v42 = vunpack.c.l.s4 %v2022_v11  ;;  %v637_v19 = vunpack.c.0.s8 %v636_v17 }
 0x249   : > { %v546_v34 = vadd.f32 %v545_v29, %v542_v4  ;;  %v555_v35 = vadd.f32 %v554_v6, %v543_v5  ;;  %v2338_v26 = vsub.s32 3, %v2324_v52  ;;  %v2026_v29 = vmov 269488144  }
 0x24a   : > { %v590_v0 = vmax.f32 %v588_v30, %v589_v32  ;;  %v599_v36 = vmax.f32 %v597_v31, %v598_v33  ;;  %v570_v51 = vunpack.c.0.s8 %v569_v42  ;;  %v2328_v20 = vsub.s32 %v637_v19, %v2324_v52 }
 0x24b   : > { %v547_v37 = vrot.slane %v546_v34, 4  ;;  %v556_v1 = vrot.slane %v555_v35, 4  ;;  %3424 = vst [vmem:[#allocation29_spill] sm:$0xff] %v2338_v26  ;;  %v704_v4 = vrot.slane %v2335_v25, %v2338_v26  ;;  %v708_v5 = vrot.slane %v2343_v27, %v2338_v26 }
 0x24c   : > { %v591_v38 = vrot.slane %v590_v0, 4  ;;  %v600_v39 = vrot.slane %v599_v36, 4  ;;  %v573_v61 = vsub.s32 %v570_v51, %v2324_v52  ;;  %v813_v6 = vunpack.c.l.s4 %v2026_v29 }
 0x24d   : > { %v548_v40 = vadd.f32 %v547_v37, %v546_v34  ;;  %v557_v41 = vadd.f32 %v556_v1, %v555_v35  ;;  %v711_v30 = vcombine.low %v704_v4, %v708_v5  ;;  %v1116_v32 = vstv %s1716_s18  ;;  %s2371_s18 = sld [smem:[#allocation8 + $0x1f]] }
 0x24e   : > { %v592_v12 = vmax.f32 %v590_v0, %v591_v38  ;;  %v601_v44 = vmax.f32 %v599_v36, %v600_v39  ;;  %v814_v31 = vunpack.c.0.s8 %v813_v6  ;;  %v1117_v33 = vstv %s1717_s28  ;;  %s2373_s28 = sld [smem:[#allocation8 + $0x9f]] }
 0x24f   : > { %v549_v45 = vrot.slane %v548_v40, 2  ;;  %v558_v46 = vrot.slane %v557_v41, 2  ;;  %v718_v34 = vrot.slane %v711_v30, %v2328_v20  ;;  %v1118_v0 = vsel %vm633_vm4, %v1116_v32, %v1117_v33 }
 0x250   : > { %v593_v47 = vrot.slane %v592_v12, 2  ;;  %v602_v48 = vrot.slane %v601_v44, 2  ;;  %v2353_v35 = vsub.s32 %v814_v31, %v2324_v52  ;;  %v910_v11 = vstv %s2367_s14  ;;  %s2433_s14 = sld [smem:[#allocation8 + $0x10]] }
 0x251   : > { %v550_v49 = vadd.f32 %v549_v45, %v548_v40  ;;  %v559_v50 = vadd.f32 %v558_v46, %v557_v41  ;;  %v1012_v40 = vstv %s2363_s7  ;;  %v1013_v41 = vstv %s2365_s12  ;;  %s2419_s7 = sld [smem:[#allocation8 + $0x4]] }
 0x252   : > { %v594_v53 = vmax.f32 %v592_v12, %v593_v47  ;;  %v603_v54 = vmax.f32 %v601_v44, %v602_v48  ;;  %v1126_v37 = vrot.slane %v1118_v0, %v2353_v35  ;;  %v911_v42 = vstv %s2369_s15  ;;  %s2421_s12 = sld [smem:[#allocation8 + $0x84]]  ;;  %s2435_s15 = sld [smem:[#allocation8 + $0x90]] }
 0x253   : > { %v551_v55 = vrot.slane %v550_v49, 1  ;;  %v560_v56 = vrot.slane %v559_v50, 1  ;;  %v1208_v12 = vstv %s2371_s18  ;;  %v2430_v51 = vsub.s32 0, %v2324_v52  ;;  %s2444_s18 = sld [smem:[#allocation8 + $0x5]] }
 0x254   : > { %v595_v57 = vrot.slane %v594_v53, 1  ;;  %v604_v58 = vrot.slane %v603_v54, 1  ;;  %v1209_v44 = vstv %s2373_s28  ;;  %s2446_s28 = sld [smem:[#allocation8 + $0x12]]  ;;  %v994_v29 = vstv %s2395_s30  ;;  %s2534_s30 = sld [smem:[#allocation8 + $0xb]] }
 0x255   : > { %v552_v59 = vadd.f32 %v551_v55, %v550_v49  ;;  %v561_v60 = vadd.f32 %v560_v56, %v559_v50  ;;  %v1014_v49 = vsel %vm633_vm4, %v1012_v40, %v1013_v41  ;;  %v2427_v50 = vsel %vm633_vm4, %v910_v11, %v911_v42  ;;  %3425 = vst [vmem:[#allocation30_spill] sm:$0xff] %v2430_v51 }
 0x256   : > { %v596_v62 = vmax.f32 %v594_v53, %v595_v57  ;;  %v605_v63 = vmax.f32 %v603_v54, %v604_v58  ;;  %v2439_v54 = vsel %vm633_vm4, %v1208_v12, %v1209_v44  ;;  %v2442_v55 = vsub.s32 1, %v2324_v52 }
 0x257   : > { %v563_v3 = vmul.f32 0.03125, %v552_v59  ;;  %v564_v7 = vmul.f32 0.03125, %v561_v60  ;;  %v783_v58 = vstv %s2383_s26  ;;  %v784_v59 = vstv %s2385_s0  ;;  %s2479_s0 = sld [smem:[#allocation8 + $0x8]] }
 0x258   : > { %v608_v8 = vcombine.low %v596_v62, %v605_v63  ;;  %3426 = vst [vmem:[#allocation31_spill] sm:$0xff] %v2442_v55  ;;  %v1022_v60 = vrot.slane %v1014_v49, %v2353_v35  ;;  %v2466_v62 = vsub.s32 4, %v2324_v52  ;;  %v987_v63 = vstv %s2387_s1  ;;  %s2481_s26 = sld [smem:[#allocation8 + $0x88]]  ;;  %s2498_s1 = sld [smem:[#allocation8 + $0x6]] }
 0x259   : > { %v567_v9 = vcombine.low %v563_v3, %v564_v7  ;;  %v988_v3 = vstv %s2389_s2  ;;  %v1218_v7 = vrot.slane %v2439_v54, %v2353_v35  ;;  %v2496_v17 = vsel %vm633_vm4, %v783_v58, %v784_v59  ;;  %s2500_s2 = sld [smem:[#allocation8 + $0x1c]] }
 0x25a   : > { %v615_v10 = vrot.slane %v608_v8, %v573_v61  ;;  %3427 = vst [vmem:[#allocation32_spill] sm:$0xff] %v2466_v62  ;;  %v995_v6 = vstv %s2397_s23  ;;  %v2525_v30 = vsub.s32 5, %v2324_v52  ;;  %v799_v31 = vstv %s2411_s22  ;;  %s2541_s23 = sld [smem:[#allocation8 + $0x8b]]  ;;  %s2543_s22 = sld [smem:[#allocation8 + $0x9c]] }
 0x25b   : > { %v574_v13 = vrot.slane %v567_v9, %v573_v61  ;;  %v800_v32 = vstv %s2413_s27  ;;  %v836_v0 = vstv %s2419_s7  ;;  %v1003_v41 = vstv %s2433_s14  ;;  %s2553_s27 = sld [smem:[#allocation8 + $0xc]]  ;;  %s2581_s14 = sld [smem:[#allocation8 + $0x23]] }
 0x25c   : > { %v622_v14 = vrot.slane %v615_v10, %v573_v61  ;;  %3429 = vst [vmem:[#allocation34_spill] sm:$0xff] %v2525_v30  ;;  %v1004_v11 = vstv %s2435_s15  ;;  %v2559_v42 = vsel %vm633_vm4, %v799_v31, %v800_v32  ;;  %v2565_v44 = vsel %vm633_vm4, %v994_v29, %v995_v6  ;;  %s2567_s7 = sld [smem:[#allocation8 + $0x8c]]  ;;  %s2583_s15 = sld [smem:[#allocation8 + $0xa3]] }
 0x25d   : > { %v581_v15 = vrot.slane %v574_v13, %v573_v61  ;;  %v920_v61 = vrot.slane %v2427_v50, %v2353_v35  ;;  %v2586_v49 = vsub.s32 6, %v2324_v52  ;;  %v1058_v29 = vstv %s2512_s10  ;;  %s2652_s10 = sld [smem:[#allocation8 + $0x25]] }
 0x25e   : > { %625 = vst.msk [vmem:[#allocation3 + $0x1] ss:$2 sm:$0x3] %vm585_vm3, %v622_v14  ;;  %v854_v50 = vstv %s2498_s1  ;;  %v892_v32 = vstv %s2479_s0  ;;  %s2689_s0 = sld [smem:[#allocation8 + $0xaa]]  ;;  %s2698_s1 = sld [smem:[#allocation8 + $0x2b]] }
 0x25f   : > { %587 = vst.msk [vmem:[#allocation3] ss:$2 sm:$0x3] %vm585_vm3, %v581_v15 }
 0x261   : > { %v947_v54 = vstv %s2553_s27  ;;  %s2775_s27 = sld [smem:[#allocation8 + $0x2f]] }
 0x266   : > { %v626_v22 = vld [vmem:[#allocation3] sm:$0xf] }
 0x267   : > { %v641_v23 = vrot.slane %v626_v22, %v2328_v20  ;;  %v2357_v36 = vmul.f32 %v718_v34, %v626_v22  ;;  %v790_v22 = vstv %s2391_s3  ;;  %s2520_s3 = sld [smem:[#allocation8 + $0x94]]  ;;  %v1453_v24 = vstv %s2775_s27 }
 0x269   : > { %721 = vrot.lane.b32.xlu1 %v641_v23, %s2021_s13  ;;  %646 = vrot.lane.b32.xlu0 %v641_v23, %s2024_s19  ;;  %v642_v2 = vcombine.high %v641_v23, %v641_v23  ;;  %v2361_v1 = vmul.f32 %v1126_v37, %v2357_v36  ;;  %v837_v37 = vstv %s2421_s12  ;;  %s2569_s12 = sld [smem:[#allocation8 + $0x9d]]  ;;  %v922_v59 = vmul.f32 %v920_v61, %v2357_v36 }
 0x26a   : > { %v855_v61 = vstv %s2506_s24  ;;  %s2636_s24 = sld [smem:[#allocation8 + $0xa0]] }
 0x26b   : > { %v2829_v14 = vrot.slane %v2361_v1, %v2328_v20 }
 0x26d   : > { %666 = vrot.lane.b32.xlu0 %v641_v23, %s2025_s8  ;;  %643 = vrot.lane.b32.xlu1 %v642_v2, %s2024_s19  ;;  %s1675_s19 = sld [smem:[#allocation8 + $0x83]]  ;;  %v1059_v6 = vstv %s2520_s3  ;;  %s2704_s3 = sld [smem:[#allocation8 + $0xa2]]  ;;  %3436 = vst [vmem:[#allocation41_spill] sm:$0xff] %v2829_v14 }
 0x271   : > { %685 = vrot.lane.b32.xlu0 %v641_v23, %s2027_s11  ;;  %663 = vrot.lane.b32.xlu1 %v642_v2, %s2025_s8  ;;  %s2375_s8 = sld [smem:[#allocation8 + $0x26]] }
 0x273   : > { %v809_v39 = vstv %s1675_s19  ;;  %s2407_s19 = sld [smem:[#allocation8 + $0x87]] }
 0x275   : > { %723 = vrot.lane.b32.xlu0 %v642_v2, %s2021_s13  ;;  %682 = vrot.lane.b32.xlu1 %v642_v2, %s2027_s11  ;;  %s1674_s13 = sld [smem:[#allocation8 + $0x3]]  ;;  %s2377_s11 = sld [smem:[#allocation8 + $0xa6]] }
 0x277   : > { %v1312_v45 = vstv %s2375_s8  ;;  %s2458_s8 = sld [smem:[#allocation8 + $0x85]] }
 0x279   : > { %743 = vrot.lane.b32.xlu0 %v642_v2, %s2028_s17  ;;  %741 = vrot.lane.b32.xlu1 %v641_v23, %s2028_s17  ;;  %s2379_s17 = sld [smem:[#allocation8 + $0x2d]]  ;;  %v886_v31 = vstv %s2407_s19 }
 0x27a   : > { %s2670_s19 = sld [smem:[#allocation8 + $0xa5]] }
 0x27b   : > { %v808_v38 = vstv %s1674_s13  ;;  %s2405_s13 = sld [smem:[#allocation8 + $0x7]]  ;;  %v1313_v46 = vstv %s2377_s11  ;;  %s2461_s11 = sld [smem:[#allocation8 + $0x92]] }
 0x27c   : > { %v810_v43 = vsel %vm633_vm4, %v808_v38, %v809_v39  ;;  %v2450_v56 = vsel %vm633_vm4, %v1312_v45, %v1313_v46  ;;  %v1024_v38 = vmul.f32 %v1022_v60, %v2357_v36  ;;  %v957_v46 = vstv %s2618_s25  ;;  %s2741_s25 = sld [smem:[#allocation8 + $0xae]] }
 0x27d   : > { %763 = vrot.lane.b32.xlu0 %v642_v2, %s2029_s29  ;;  %761 = vrot.lane.b32.xlu1 %v641_v23, %s2029_s29  ;;  %s2381_s29 = sld [smem:[#allocation8 + $0xad]]  ;;  %v818_v53 = vrot.slane %v810_v43, %v2353_v35  ;;  %v1322_v10 = vrot.slane %v2450_v56, %v2353_v35  ;;  %v791_v23 = vstv %s2393_s5  ;;  %v2510_v2 = vsel %vm633_vm4, %v987_v63, %v988_v3  ;;  %s2522_s5 = sld [smem:[#allocation8 + $0x9]] }
 0x27e   : > { %v2549_v40 = vsel %vm633_vm4, %v790_v22, %v791_v23  ;;  %v845_v43 = vstv %s2444_s18  ;;  %v846_v12 = vstv %s2458_s8  ;;  %v2593_v58 = vrot.slane %v1024_v38, %v2328_v20  ;;  %s2599_s18 = sld [smem:[#allocation8 + $0x24]] }
 0x27f   : > { %v1416_v47 = vstv %s2379_s17  ;;  %s2470_s17 = sld [smem:[#allocation8 + $0x13]]  ;;  %v820_v9 = vmul.f32 %v818_v53, %v2357_v36  ;;  %v2590_v53 = vsel %vm633_vm4, %v1003_v41, %v1004_v11  ;;  %s2601_s8 = sld [smem:[#allocation8 + $0xa4]]  ;;  %v2605_v60 = vsel %vm633_vm4, %v845_v43, %v846_v12 }
 0x280   : > { %v1040_v63 = vstv %s2446_s28  ;;  %s2626_s28 = sld [smem:[#allocation8 + $0x9e]]  ;;  %v902_v38 = vstv %s2532_s21  ;;  %v2634_v41 = vrot.slane %v922_v59, %v2328_v20  ;;  %s2650_s21 = sld [smem:[#allocation8 + $0xa1]]  ;;  %v2656_v59 = vsel %vm633_vm4, %v854_v50, %v855_v61 }
 0x281   : > { %v2530_v33 = vrot.slane %v820_v9, %v2328_v20  ;;  %v1041_v3 = vstv %s2461_s11  ;;  %v885_v23 = vstv %s2405_s13  ;;  %s2628_s11 = sld [smem:[#allocation8 + $0x20]]  ;;  %s2638_s13 = sld [smem:[#allocation8 + $0x21]]  ;;  %v2664_v11 = vsel %vm633_vm4, %v1058_v29, %v1059_v6 }
 0x282   : > { %v938_v50 = vstv %s2534_s30  ;;  %v1220_v61 = vmul.f32 %v1218_v7, %v2357_v36  ;;  %v1183_v29 = vstv %s2500_s2  ;;  %v1184_v6 = vstv %s2543_s22  ;;  %s2715_s2 = sld [smem:[#allocation8 + $0xa8]]  ;;  %s2717_s30 = sld [smem:[#allocation8 + $0xab]] }
 0x283   : > { %v1417_v48 = vstv %s2381_s29  ;;  %s2472_s29 = sld [smem:[#allocation8 + $0x93]]  ;;  %v948_v7 = vstv %s2567_s7  ;;  %v956_v12 = vstv %s2610_s6  ;;  %v1199_v56 = vstv %s2620_s16  ;;  %s2739_s6 = sld [smem:[#allocation8 + $0x2e]] }
 0x284   : > { %v2454_v57 = vsel %vm633_vm4, %v1416_v47, %v1417_v48  ;;  %v2579_v48 = vsel %vm633_vm4, %v836_v0, %v837_v37  ;;  %v893_v0 = vstv %s2481_s26  ;;  %v901_v37 = vstv %s2522_s5  ;;  %s2696_s26 = sld [smem:[#allocation8 + $0x22]]  ;;  %s2706_s5 = sld [smem:[#allocation8 + $0x28]] }
 0x285   : > { %v1426_v13 = vrot.slane %v2454_v57, %v2353_v35  ;;  %v1049_v9 = vstv %s2470_s17  ;;  %v2648_v47 = vsel %vm633_vm4, %v1040_v63, %v1041_v3  ;;  %v2668_v63 = vsel %vm633_vm4, %v885_v23, %v886_v31  ;;  %s2672_s17 = sld [smem:[#allocation8 + $0x27]]  ;;  %s2759_s16 = sld [smem:[#allocation8 + $0x29]] }
 0x286   : > { %v2676_v3 = vsel %vm633_vm4, %v892_v32, %v893_v0  ;;  %v939_v23 = vstv %s2541_s23  ;;  %v1190_v31 = vstv %s2555_s9  ;;  %v1191_v32 = vstv %s2569_s12  ;;  %s2725_s9 = sld [smem:[#allocation8 + $0x2c]]  ;;  %s2761_s22 = sld [smem:[#allocation8 + $0xa9]] }
 0x287   : > { %v1287_v0 = vstv %s2581_s14  ;;  %v2722_v45 = vrot.slane %v1220_v61, %v2328_v20  ;;  %v1295_v4 = vstv %s2601_s8  ;;  %s2727_s23 = sld [smem:[#allocation8 + $0xac]]  ;;  %v2731_v39 = vsel %vm633_vm4, %v938_v50, %v939_v23  ;;  %s2777_s7 = sld [smem:[#allocation8 + $0xaf]] }
 0x288   : > { %v1428_v34 = vmul.f32 %v1426_v13, %v2357_v36  ;;  %v2745_v61 = vsel %vm633_vm4, %v947_v54, %v948_v7  ;;  %v2749_v50 = vsel %vm633_vm4, %v1183_v29, %v1184_v6  ;;  %v2753_v23 = vsel %vm633_vm4, %v1190_v31, %v1191_v32  ;;  %s2787_s12 = sld [smem:[#allocation8 + $0x15]]  ;;  %s2797_s14 = sld [smem:[#allocation8 + $0x30]] }
 0x289   : > { %v1050_v22 = vstv %s2472_s29  ;;  %s2687_s29 = sld [smem:[#allocation8 + $0xa7]]  ;;  %3430 = vst [vmem:[#allocation35_spill] sm:$0xff] %v2722_v45  ;;  %v1391_v29 = vstv %s2612_s20  ;;  %v1237_v6 = vstv %s2636_s24  ;;  %s2789_s20 = sld [smem:[#allocation8 + $0x95]]  ;;  %v1246_v54 = vstv %s2650_s21 }
 0x28a   : > { %v2660_v43 = vsel %vm633_vm4, %v1049_v9, %v1050_v22  ;;  %v2680_v9 = vsel %vm633_vm4, %v901_v37, %v902_v38  ;;  %v1288_v37 = vstv %s2583_s15  ;;  %v1294_v38 = vstv %s2599_s18  ;;  %s2799_s15 = sld [smem:[#allocation8 + $0xb0]]  ;;  %s2805_s18 = sld [smem:[#allocation8 + $0x16]] }
 0x28b   : > { %v1324_v22 = vmul.f32 %v1322_v10, %v2357_v36  ;;  %v1200_v10 = vstv %s2626_s28  ;;  %v2757_v35 = vsel %vm633_vm4, %v1287_v0, %v1288_v37  ;;  %v2765_v36 = vsel %vm633_vm4, %v956_v12, %v957_v46  ;;  %s2807_s8 = sld [smem:[#allocation8 + $0x96]]  ;;  %s2813_s28 = sld [smem:[#allocation8 + $0x17]] }
 0x28c   : > { %v2769_v57 = vsel %vm633_vm4, %v1294_v38, %v1295_v4  ;;  %v2781_v46 = vsel %vm633_vm4, %v1199_v56, %v1200_v10  ;;  %v1236_v12 = vstv %s2628_s11  ;;  %v1303_v7 = vstv %s2652_s10  ;;  %s2815_s11 = sld [smem:[#allocation8 + $0x97]]  ;;  %s3029_s24 = sld [smem:[#allocation8 + $0x19]] }
 0x28d   : > { %3431 = vst [vmem:[#allocation36_spill] sm:$0xff] %v2769_v57  ;;  %v2772_v13 = vrot.slane %v1324_v22, %v2328_v20  ;;  %v1245_v22 = vstv %s2638_s13  ;;  %v2795_v31 = vrot.slane %v1428_v34, %v2328_v20  ;;  %v1304_v32 = vstv %s2670_s19  ;;  %s2030_s13 = smov 48   ;;  %s2031_s21 = smov 16  }
 0x28e   : > { %v1340_v0 = vstv %s2672_s17  ;;  %v1392_v38 = vstv %s2689_s0  ;;  %v1254_v56 = vstv %s2696_s26  ;;  %v1255_v10 = vstv %s2704_s3  ;;  %s2032_s10 = smov 32   ;;  %s3135_s19 = sld [smem:[#allocation8 + $0x99]] }
 0x28f   : > { %3432 = vst [vmem:[#allocation37_spill] sm:$0xff] %v2772_v13  ;;  %3433 = vst [vmem:[#allocation38_spill] sm:$0xff] %v2795_v31  ;;  %v1341_v37 = vstv %s2687_s29  ;;  %v1349_v4 = vstv %s2706_s5  ;;  %v1350_v5 = vstv %s2715_s2  ;;  %v2819_v34 = vsel %vm633_vm4, %v1236_v12, %v1237_v6  ;;  %s3137_s17 = sld [smem:[#allocation8 + $0x1a]]  ;;  %s2033_s0 = smov 112  }
 0x290   : > { %3434 = vst [vmem:[#allocation39_spill] sm:$0xff] %v2819_v34  ;;  %v2823_v19 = vsel %vm633_vm4, %v1245_v22, %v1246_v54  ;;  %v2835_v6 = vsel %vm633_vm4, %v1303_v7, %v1304_v32  ;;  %v2839_v22 = vsel %vm633_vm4, %v1340_v0, %v1341_v37  ;;  %v1398_v54 = vstv %s2698_s1  ;;  %s3144_s29 = sld [smem:[#allocation8 + $0x9a]]  ;;  %s3167_s26 = sld [smem:[#allocation8 + $0x1b]] }
 0x291   : > { %3435 = vst [vmem:[#allocation40_spill] sm:$0xff] %v2823_v19  ;;  %3437 = vst [vmem:[#allocation42_spill] sm:$0xff] %v2835_v6  ;;  %v2846_v1 = vsel %vm633_vm4, %v1254_v56, %v1255_v10  ;;  %v2850_v15 = vsel %vm633_vm4, %v1349_v4, %v1350_v5  ;;  %v2854_v7 = vsel %vm633_vm4, %v1391_v29, %v1392_v38  ;;  %v1399_v32 = vstv %s2717_s30  ;;  %s3169_s1 = sld [smem:[#allocation8 + $0x9b]]  ;;  %s2034_s3 = smov 96  }
 0x292   : > { %3438 = vst [vmem:[#allocation43_spill] sm:$0xff] %v2839_v22  ;;  %3439 = vst [vmem:[#allocation44_spill] sm:$0xff] %v2846_v1  ;;  %v1407_v0 = vstv %s2725_s9  ;;  %v1408_v37 = vstv %s2727_s23  ;;  %v1444_v20 = vstv %s2739_s6  ;;  %v1445_v56 = vstv %s2741_s25  ;;  %s2035_s5 = smov 80   ;;  %s3481_s6 = sld [smem:[#allocation23_spill]] }
 0x293   : > { %3440 = vst [vmem:[#allocation45_spill] sm:$0xff] %v2850_v15  ;;  %v1358_v10 = vstv %s2759_s16  ;;  %v1359_v28 = vstv %s2761_s22  ;;  %v1454_v5 = vstv %s2777_s7  ;;  %v1462_v18 = vstv %s2797_s14  ;;  %s3482_s25 = sld [smem:[#allocation17_spill]]  ;;  %s3483_s16 = sld [smem:[#allocation22_spill]] }
 0x294   : > { %v1463_v29 = vstv %s2799_s15  ;;  %v1091_v38 = vstv %s2787_s12  ;;  %v1092_v26 = vstv %s2789_s20  ;;  %v1098_v15 = vstv %s2805_s18  ;;  %s3489_s15 = sld [smem:[#allocation53_spill]] }
 0x295   : > { %v1099_v13 = vstv %s2807_s8  ;;  %v3441_v22 = vrot.slane %v2335_v25, %v2430_v51  ;;  %v3442_v6 = vrot.slane %v2343_v27, %v2430_v51  ;;  %v1107_v1 = vstv %s2813_s28  ;;  %s3490_s8 = sld [smem:[#allocation20_spill]] }
 0x296   : > { %v1108_v19 = vstv %s2815_s11  ;;  %v2887_v34 = vsel %vm633_vm4, %v1358_v10, %v1359_v28  ;;  %v2907_v28 = vsel %vm633_vm4, %v1462_v18, %v1463_v29  ;;  %v3445_v18 = vrot.slane %v2335_v25, %v2442_v55 }
 0x297   : > { %v3448_v51 = vrot.slane %v2335_v25, %v2492_v16 }
 0x299   : > { %s1774_s22 = sshll.u32 %s3482_s25, 10  ;;  %s3488_s27 = sshll.u32 %s3483_s16, 6 }
 0x29a   : > { %s283_s7 = scalar_lea.vmem [#allocation9], %s3488_s27  ;;  %s3276_s18 = scalar_lea.hbm %s3489_s15, %s1774_s22 }
 0x29b   : > { %s1569_s12 = sshll.u32 %s283_s7, 4  ;;  %s1556_s28 = scalar_lea.sflag [#allocation6], %s3483_s16  ;;  %s3278_s12 = int_to_ptr.vmem [resolvable:$true] %s1569_s12 }
 0x29c   : > { %s1943_s11 = scalar_lea.vmem %s3278_s12, 1024  ;;  %p3491_p12 = scmp.ne.s32.totalorder %s3490_s8, 0 }
 0x29d   : > { %p1944_p5 = scmp.ne.s32.totalorder %s3278_s12, %s1943_s11 }
 0x29f   : > { %p1945_p8 = pnand %p1944_p5, %p3491_p12 }
 0x2a1   : > { %p1946_p9 = pneg %p1945_p8 }
 0x2db   : > { %v2831_v8 = vpop.permute.xlu1 %721  ;;  %v647_v12 = vpop.permute.xlu0 %646 }
 0x2df   : > { %v667_v4 = vpop.permute.xlu0 %666  ;;  %v644_v21 = vpop.permute.xlu1 %643 }
 0x2e0   : > { %v649_v14 = vsel %vm648_vm5, %v647_v12, %v644_v21  ;;  %v652_v31 = vsel %vm648_vm5, %v644_v21, %v647_v12  ;;  %v2891_v21 = vsel %vm633_vm4, %v1398_v54, %v1399_v32  ;;  %v2899_v12 = vsel %vm633_vm4, %v1444_v20, %v1445_v56 }
 0x2e1   : > { %v2876_v45 = vmul.f32 %v3441_v22, %v652_v31  ;;  %v2881_v57 = vmul.f32 %v3442_v6, %v649_v14  ;;  %v2895_v31 = vsel %vm633_vm4, %v1407_v0, %v1408_v37  ;;  %v2903_v22 = vsel %vm633_vm4, %v1453_v24, %v1454_v5 }
 0x2e2   : > { %v2911_v54 = vsel %vm633_vm4, %v1091_v38, %v1092_v26  ;;  %v2915_v32 = vsel %vm633_vm4, %v1098_v15, %v1099_v13  ;;  %v2923_v37 = vsel %vm633_vm4, %v1107_v1, %v1108_v19  ;;  %v3446_v15 = vrot.slane %v2343_v27, %v2442_v55 }
 0x2e3   : > { %v686_v14 = vpop.permute.xlu0 %685  ;;  %v664_v6 = vpop.permute.xlu1 %663  ;;  %3443 = vst [vmem:[#allocation46_spill] sm:$0xff] %v2915_v32  ;;  %v787_v24 = vmul.f32 %v2496_v17, %v2881_v57  ;;  %3444 = vst [vmem:[#allocation47_spill] sm:$0xff] %v2923_v37  ;;  %v786_v56 = vmul.f32 %v2496_v17, %v2876_v45  ;;  %v991_v10 = vmul.f32 %v2510_v2, %v2881_v57 }
 0x2e4   : > { %v668_v20 = vsel %vm367_vm2, %v667_v4, %v664_v6  ;;  %v671_v0 = vsel %vm367_vm2, %v664_v6, %v667_v4  ;;  %v990_v19 = vmul.f32 %v2510_v2, %v2876_v45  ;;  %v2943_v1 = vmul.f32 %v2668_v63, %v2881_v57 }
 0x2e5   : > { %v2928_v26 = vmul.f32 %v3445_v18, %v671_v0  ;;  %v2933_v13 = vmul.f32 %v3446_v15, %v668_v20  ;;  %v2947_v5 = vmul.f32 %v2668_v63, %v2876_v45  ;;  %v2951_v4 = vmul.f32 %v2749_v50, %v2876_v45 }
 0x2e6   : > { %v3447_v55 = vrot.slane %v2343_v27, %v2466_v62 }
 0x2e7   : > { %v724_v29 = vpop.permute.xlu0 %723  ;;  %v683_v17 = vpop.permute.xlu1 %682  ;;  %v794_v38 = vmul.f32 %v2549_v40, %v2933_v13  ;;  %v793_v2 = vmul.f32 %v2549_v40, %v2928_v26  ;;  %v998_v6 = vmul.f32 %v2565_v44, %v2933_v13  ;;  %v997_v20 = vmul.f32 %v2565_v44, %v2928_v26 }
 0x2e8   : > { %v726_v63 = vsel %vm725_vm6, %v2831_v8, %v724_v29  ;;  %v730_v0 = vsel %vm725_vm6, %v724_v29, %v2831_v8  ;;  %v687_v18 = vsel %vm309_vm0, %v686_v14, %v683_v17  ;;  %v690_v15 = vsel %vm309_vm0, %v683_v17, %v686_v14 }
 0x2e9   : > { %v2970_v40 = vmul.f32 %v3447_v55, %v730_v0  ;;  %v2975_v52 = vmul.f32 %v3448_v51, %v690_v15  ;;  %v3449_v44 = vrot.slane %v2343_v27, %v2492_v16  ;;  %v2984_v8 = vmul.f32 %v2749_v50, %v2881_v57 }
 0x2ea   : > { %v3450_v14 = vrot.slane %v2335_v25, %v2466_v62  ;;  %v796_v55 = vadd.f32 %v794_v38, %v787_v24  ;;  %v795_v17 = vadd.f32 %v793_v2, %v786_v56  ;;  %v2993_v51 = vmul.f32 %v2757_v35, %v2876_v45 }
 0x2eb   : > { %v2980_v37 = vmul.f32 %v3449_v44, %v687_v18  ;;  %v744_v0 = vpop.permute.xlu0 %743  ;;  %v742_v15 = vpop.permute.xlu1 %741  ;;  %v802_v50 = vmul.f32 %v2559_v42, %v2975_v52  ;;  %v1000_v44 = vadd.f32 %v998_v6, %v991_v10  ;;  %v999_v16 = vadd.f32 %v997_v20, %v990_v19 }
 0x2ec   : > { %v2989_v29 = vmul.f32 %v3450_v14, %v726_v63  ;;  %v746_v62 = vsel %vm745_vm7, %v742_v15, %v744_v0  ;;  %v750_v63 = vsel %vm745_vm7, %v744_v0, %v742_v15  ;;  %v840_v24 = vmul.f32 %v2579_v48, %v2970_v40 }
 0x2ed   : > { %v803_v18 = vmul.f32 %v2559_v42, %v2980_v37  ;;  %v1007_v56 = vmul.f32 %v2590_v53, %v2980_v37  ;;  %v3451_v38 = vrot.slane %v2335_v25, %v2525_v30  ;;  %v3452_v42 = vrot.slane %v2343_v27, %v2525_v30 }
 0x2ee   : > { %v804_v6 = vadd.f32 %v802_v50, %v795_v17  ;;  %v839_v20 = vmul.f32 %v2579_v48, %v2989_v29  ;;  %v1044_v0 = vmul.f32 %v2648_v47, %v2970_v40  ;;  %v1006_v15 = vmul.f32 %v2590_v53, %v2975_v52 }
 0x2ef   : > { %v3008_v2 = vmul.f32 %v3451_v38, %v746_v62  ;;  %v3013_v10 = vmul.f32 %v3452_v42, %v750_v63  ;;  %v805_v19 = vadd.f32 %v803_v18, %v796_v55  ;;  %v1009_v14 = vadd.f32 %v1007_v56, %v1000_v44  ;;  %v764_v32 = vpop.permute.xlu0 %763  ;;  %v762_v62 = vpop.permute.xlu1 %761 }
 0x2f0   : > { %v3453_v38 = vcombine.high %v2530_v33, %v2530_v33  ;;  %v832_v17 = vadd.f32 %v2530_v33, %v804_v6  ;;  %v896_v48 = vmul.f32 %v2676_v3, %v2933_v13  ;;  %v766_v18 = vsel %vm765_vm8, %v762_v62, %v764_v32 }
 0x2f1   : > { %v849_v55 = vmul.f32 %v2605_v60, %v3013_v10  ;;  %v770_v53 = vsel %vm765_vm8, %v764_v32, %v762_v62  ;;  %v848_v50 = vmul.f32 %v2605_v60, %v3008_v2  ;;  %v3454_v44 = vcombine.high %v2593_v58, %v2593_v58 }
 0x2f2   : > { %v833_v30 = vadd.f32 %v3453_v38, %v805_v19  ;;  %v3455_v56 = vrot.slane %v2335_v25, %v2586_v49  ;;  %v3456_v42 = vrot.slane %v2343_v27, %v2586_v49  ;;  %v841_v38 = vadd.f32 %v839_v20, %v832_v17 }
 0x2f3   : > { %v1037_v63 = vadd.f32 %v3454_v44, %v1009_v14  ;;  %v1053_v60 = vmul.f32 %v2660_v43, %v3013_v10  ;;  %v1008_v62 = vadd.f32 %v1006_v15, %v999_v16  ;;  %v3052_v14 = vmul.f32 %v2757_v35, %v2881_v57 }
 0x2f4   : > { %v3041_v33 = vmul.f32 %v3455_v56, %v766_v18  ;;  %v3046_v19 = vmul.f32 %v3456_v42, %v770_v53  ;;  %v842_v6 = vadd.f32 %v840_v24, %v833_v30  ;;  %v850_v18 = vadd.f32 %v848_v50, %v841_v38 }
 0x2f5   : > { %v1046_v32 = vadd.f32 %v1044_v0, %v1037_v63  ;;  %v1036_v24 = vadd.f32 %v2593_v58, %v1008_v62  ;;  %v1043_v16 = vmul.f32 %v2648_v47, %v2989_v29  ;;  %v898_v0 = vadd.f32 %v896_v48, %v2943_v1 }
 0x2f6   : > { %v851_v44 = vadd.f32 %v849_v55, %v842_v6  ;;  %v858_v25 = vmul.f32 %v2656_v59, %v3046_v19  ;;  %v857_v27 = vmul.f32 %v2656_v59, %v3041_v33  ;;  %v1062_v30 = vmul.f32 %v2664_v11, %v3046_v19 }
 0x2f7   : > { %v1055_v53 = vadd.f32 %v1053_v60, %v1046_v32  ;;  %v905_v15 = vmul.f32 %v2680_v9, %v2980_v37  ;;  %v1045_v55 = vadd.f32 %v1043_v16, %v1036_v24  ;;  %v1052_v59 = vmul.f32 %v2660_v43, %v3008_v2 }
 0x2f8   : > { %v860_v35 = vadd.f32 %v858_v25, %v851_v44  ;;  %v859_v20 = vadd.f32 %v857_v27, %v850_v18  ;;  %v1061_v17 = vmul.f32 %v2664_v11, %v3041_v33  ;;  %v3072_v58 = vmul.f32 %v2854_v7, %v2876_v45 }
 0x2f9   : > { %v907_v47 = vadd.f32 %v905_v15, %v898_v0  ;;  %v895_v1 = vmul.f32 %v2676_v3, %v2928_v26  ;;  %v904_v48 = vmul.f32 %v2680_v9, %v2975_v52  ;;  %v1144_v50 = vstv %s3029_s24  ;;  %s2036_s24 = smov [#allocation9]  }
 0x2fa   : > { %862 = vrot.lane.b32.xlu1 %v860_v35, %s2030_s13  ;;  %866 = vrot.lane.b32.xlu0 %v859_v20, %s2030_s13  ;;  %v1064_v63 = vadd.f32 %v1062_v30, %v1055_v53  ;;  %v1054_v43 = vadd.f32 %v1052_v59, %v1045_v55  ;;  %v942_v11 = vmul.f32 %v2731_v39, %v2970_v40  ;;  %v3459_v20 = vld [vmem:[#allocation40_spill] sm:$0xff]  ;;  %v3462_v59 = vld [vmem:[#allocation42_spill] sm:$0xff]  ;;  %s1947_s13 = sshll.u32 %s2036_s24, 4  ;;  %s1948_s13 = int_to_ptr.vmem [resolvable:$false] %s1947_s13 }
 0x2fb   : > { %v3083_v56 = vmul.f32 %v2854_v7, %v2881_v57  ;;  %v3457_v42 = vcombine.high %v2634_v41, %v2634_v41  ;;  %v897_v38 = vadd.f32 %v895_v1, %v2947_v5  ;;  %v1193_v3 = vmul.f32 %v2753_v23, %v2928_v26  ;;  %v3463_v1 = vld [vmem:[#allocation35_spill] sm:$0xff]  ;;  %p1950_p10 = scmp.lt.s32.totalorder %s3278_s12, %s1948_s13 }
 0x2fc   : > { %v1202_v9 = vmul.f32 %v2781_v46, %v2975_v52  ;;  %v1063_v32 = vadd.f32 %v1061_v17, %v1054_v43  ;;  %v951_v60 = vmul.f32 %v2745_v61, %v3013_v10  ;;  %v960_v7 = vmul.f32 %v2765_v36, %v3046_v19 }
 0x2fd   : > { %v935_v6 = vadd.f32 %v3457_v42, %v907_v47  ;;  %v941_v62 = vmul.f32 %v2731_v39, %v2989_v29  ;;  %v906_v44 = vadd.f32 %v904_v48, %v897_v38  ;;  %v1195_v25 = vadd.f32 %v1193_v3, %v2951_v4  ;;  %v3458_v39 = vld [vmem:[#allocation39_spill] sm:$0xff] }
 0x2fe   : > { %1066 = vrot.lane.b32.xlu1 %v1064_v63, %s2031_s21  ;;  %v1194_v18 = vmul.f32 %v2753_v23, %v2933_v13  ;;  %1070 = vrot.lane.b32.xlu0 %v1063_v32, %s2031_s21  ;;  %v950_v27 = vmul.f32 %v2745_v61, %v3008_v2  ;;  %v959_v53 = vmul.f32 %v2765_v36, %v3041_v33  ;;  %v3460_v61 = vld [vmem:[#allocation44_spill] sm:$0xff] }
 0x2ff   : > { %v944_v5 = vadd.f32 %v942_v11, %v935_v6  ;;  %v1239_v30 = vmul.f32 %v3458_v39, %v2989_v29  ;;  %v1203_v24 = vmul.f32 %v2781_v46, %v2980_v37  ;;  %v934_v4 = vadd.f32 %v2634_v41, %v906_v44  ;;  %v3461_v36 = vld [vmem:[#allocation36_spill] sm:$0xff] }
 0x300   : > { %v1204_v35 = vadd.f32 %v1202_v9, %v1195_v25  ;;  %v1196_v23 = vadd.f32 %v1194_v18, %v2984_v8  ;;  %v1248_v0 = vmul.f32 %v3459_v20, %v3008_v2  ;;  %v1257_v15 = vmul.f32 %v3460_v61, %v3041_v33 }
 0x301   : > { %v953_v16 = vadd.f32 %v951_v60, %v944_v5  ;;  %v1297_v55 = vmul.f32 %v3461_v36, %v2928_v26  ;;  %v1306_v17 = vmul.f32 %v3462_v59, %v2975_v52  ;;  %v943_v46 = vadd.f32 %v941_v62, %v934_v4  ;;  %v3465_v60 = vld [vmem:[#allocation43_spill] sm:$0xff] }
 0x302   : > { %v1232_v48 = vadd.f32 %v3463_v1, %v1204_v35  ;;  %v1205_v41 = vadd.f32 %v1203_v24, %v1196_v23  ;;  %v1240_v8 = vmul.f32 %v3458_v39, %v2970_v40  ;;  %v1298_v43 = vmul.f32 %v3461_v36, %v2933_v13 }
 0x303   : > { %v962_v47 = vadd.f32 %v960_v7, %v953_v16  ;;  %v1299_v63 = vadd.f32 %v1297_v55, %v2993_v51  ;;  %v1307_v11 = vmul.f32 %v3462_v59, %v2980_v37  ;;  %v952_v42 = vadd.f32 %v950_v27, %v943_v46  ;;  %v3466_v27 = vld [vmem:[#allocation37_spill] sm:$0xff] }
 0x304   : > { %v1241_v6 = vadd.f32 %v1239_v30, %v1232_v48  ;;  %v3464_v38 = vcombine.high %v3463_v1, %v3463_v1  ;;  %v1249_v9 = vmul.f32 %v3459_v20, %v3013_v10  ;;  %v1258_v51 = vmul.f32 %v3460_v61, %v3046_v19  ;;  %v3467_v30 = vld [vmem:[#allocation45_spill] sm:$0xff]  ;;  %v3469_v48 = vld [vmem:[#allocation38_spill] sm:$0xff] }
 0x305   : > { %964 = vrot.lane.b32.xlu1 %v962_v47, %s2032_s10  ;;  %v1308_v32 = vadd.f32 %v1306_v17, %v1299_v63  ;;  %v1343_v7 = vmul.f32 %v3465_v60, %v2989_v29  ;;  %v1300_v62 = vadd.f32 %v1298_v43, %v3052_v14  ;;  %v961_v5 = vadd.f32 %v959_v53, %v952_v42 }
 0x306   : > { %v1233_v3 = vadd.f32 %v3464_v38, %v1205_v41  ;;  %v1250_v44 = vadd.f32 %v1248_v0, %v1241_v6  ;;  %v1401_v18 = vmul.f32 %v2891_v21, %v2928_v26  ;;  %v1352_v24 = vmul.f32 %v3467_v30, %v3008_v2 }
 0x307   : > { %v1336_v39 = vadd.f32 %v3466_v27, %v1308_v32  ;;  %v1309_v16 = vadd.f32 %v1307_v11, %v1300_v62  ;;  %v1410_v4 = vmul.f32 %v2895_v31, %v2975_v52  ;;  %968 = vrot.lane.b32.xlu0 %v961_v5, %s2032_s10  ;;  %v1361_v53 = vmul.f32 %v2887_v34, %v3041_v33  ;;  %s1949_s10 = scalar_lea.vmem %s1948_s13, 2048 }
 0x308   : > { %v1242_v25 = vadd.f32 %v1240_v8, %v1233_v3  ;;  %v1259_v35 = vadd.f32 %v1257_v15, %v1250_v44  ;;  %v1403_v23 = vadd.f32 %v1401_v18, %v3072_v58  ;;  %v3468_v0 = vcombine.high %v3466_v27, %v3466_v27  ;;  %v3471_v44 = vld [vmem:[#allocation46_spill] sm:$0xff]  ;;  %p1951_p1 = scmp.lt.s32.totalorder %s1949_s10, %s1943_s11 }
 0x309   : > { %v1345_v20 = vadd.f32 %v1343_v7, %v1336_v39  ;;  %v1344_v36 = vmul.f32 %v3465_v60, %v2970_v40  ;;  %v1402_v55 = vmul.f32 %v2891_v21, %v2933_v13  ;;  %v1353_v59 = vmul.f32 %v3467_v30, %v3013_v10 }
 0x30a   : > { %v1251_v14 = vadd.f32 %v1249_v9, %v1242_v25  ;;  %v1337_v61 = vadd.f32 %v3468_v0, %v1309_v16  ;;  %1263 = vrot.lane.b32.xlu1 %v1259_v35, %s2033_s0  ;;  %v1412_v58 = vadd.f32 %v1410_v4, %v1403_v23  ;;  %v1411_v17 = vmul.f32 %v2895_v31, %v2980_v37  ;;  %p1952_p4 = por %p1951_p1, %p1950_p10 }
 0x30b   : > { %v1354_v47 = vadd.f32 %v1352_v24, %v1345_v20  ;;  %v1362_v21 = vmul.f32 %v2887_v34, %v3046_v19  ;;  %v1404_v1 = vadd.f32 %v1402_v55, %v3083_v56  ;;  %v1447_v8 = vmul.f32 %v2899_v12, %v2989_v29 }
 0x30c   : > { %v1260_v15 = vadd.f32 %v1258_v51, %v1251_v14  ;;  %v1346_v46 = vadd.f32 %v1344_v36, %v1337_v61  ;;  %v1440_v41 = vadd.f32 %v3469_v48, %v1412_v58  ;;  %v1145_v63 = vstv %s3135_s19  ;;  %p1953_p11 = pnand %p1952_p4, %p1946_p9 }
 0x30d   : > { %v1153_v43 = vstv %s3137_s17  ;;  %v1363_v31 = vadd.f32 %v1361_v53, %v1354_v47  ;;  %v1413_v42 = vadd.f32 %v1411_v17, %v1404_v1  ;;  %v1154_v6 = vstv %s3144_s29 }
 0x30e   : > { %1265 = vrot.lane.b32.xlu0 %v1260_v15, %s2033_s0  ;;  %v1355_v11 = vadd.f32 %v1353_v59, %v1346_v46  ;;  %v1449_v38 = vadd.f32 %v1447_v8, %v1440_v41  ;;  %v1456_v3 = vmul.f32 %v2903_v22, %v3008_v2  ;;  %v1465_v34 = vmul.f32 %v2907_v28, %v3041_v33 }
 0x30f   : > { %v1448_v56 = vmul.f32 %v2899_v12, %v2970_v40  ;;  %1367 = vrot.lane.b32.xlu1 %v1363_v31, %s2034_s3  ;;  %v3470_v51 = vcombine.high %v3469_v48, %v3469_v48  ;;  %v1457_v60 = vmul.f32 %v2903_v22, %v3013_v10  ;;  %v1466_v7 = vmul.f32 %v2907_v28, %v3046_v19  ;;  %v3472_v22 = vld [vmem:[#allocation47_spill] sm:$0xff] }
 0x310   : > { %v1364_v9 = vadd.f32 %v1362_v21, %v1355_v11  ;;  %v1458_v62 = vadd.f32 %v1456_v3, %v1449_v38  ;;  %v1094_v12 = vmul.f32 %v2911_v54, %v2876_v45  ;;  %v1095_v5 = vmul.f32 %v2911_v54, %v2881_v57  ;;  %v3477_v3 = vld [vmem:[#allocation33_spill] sm:$0xff] }
 0x311   : > { %v1441_v32 = vadd.f32 %v3470_v51, %v1413_v42  ;;  %v1101_v25 = vmul.f32 %v3471_v44, %v2928_v26  ;;  %v1102_v27 = vmul.f32 %v3471_v44, %v2933_v13  ;;  %v1110_v39 = vmul.f32 %v3472_v22, %v2975_v52  ;;  %v3474_v13 = vld [vmem:[#allocation41_spill] sm:$0xff]  ;;  %v3476_v42 = vld [vmem:[#allocation30_spill] sm:$0xff] }
 0x312   : > { %1369 = vrot.lane.b32.xlu0 %v1364_v9, %s2034_s3  ;;  %v1111_v28 = vmul.f32 %v3472_v22, %v2980_v37  ;;  %v1467_v30 = vadd.f32 %v1465_v34, %v1458_v62  ;;  %v1162_v45 = vstv %s3167_s26  ;;  %v1163_v16 = vstv %s3169_s1  ;;  %v3478_v9 = vld [vmem:[#allocation31_spill] sm:$0xff] }
 0x313   : > { %v1450_v18 = vadd.f32 %v1448_v56, %v1441_v32  ;;  %v1103_v24 = vadd.f32 %v1101_v25, %v1094_v12  ;;  %v1104_v57 = vadd.f32 %v1102_v27, %v1095_v5  ;;  %v1146_v26 = vsel %vm633_vm4, %v1144_v50, %v1145_v63  ;;  %v3480_v25 = vld [vmem:[#allocation34_spill] sm:$0xff] }
 0x314   : > { %1471 = vrot.lane.b32.xlu1 %v1467_v30, %s2035_s5  ;;  %v1137_v14 = vcombine.high %v3474_v13, %v3474_v13  ;;  %v1155_v37 = vsel %vm633_vm4, %v1153_v43, %v1154_v6  ;;  %v1164_v23 = vsel %vm633_vm4, %v1162_v45, %v1163_v16  ;;  %v1147_v0 = vmul.f32 %v1146_v26, %v2989_v29 }
 0x315   : > { %v1459_v4 = vadd.f32 %v1457_v60, %v1450_v18  ;;  %v1112_v35 = vadd.f32 %v1110_v39, %v1103_v24  ;;  %v1113_v53 = vadd.f32 %v1111_v28, %v1104_v57  ;;  %v1148_v61 = vmul.f32 %v1146_v26, %v2970_v40  ;;  %v3479_v60 = vld [vmem:[#allocation32_spill] sm:$0xff] }
 0x316   : > { %v1156_v55 = vmul.f32 %v1155_v37, %v3008_v2  ;;  %v1165_v15 = vmul.f32 %v1164_v23, %v3041_v33  ;;  %v1157_v58 = vmul.f32 %v1155_v37, %v3013_v10  ;;  %v1166_v17 = vmul.f32 %v1164_v23, %v3046_v19  ;;  %v629_v2 = vld [vmem:[%s3327_s4] sm:$0x7f]  ;;  %v630_v10 = vld [vmem:[%s3327_s4 + $0x8] sm:$0x7f] }
 0x317   : > { %v1468_v52 = vadd.f32 %v1466_v7, %v1459_v4  ;;  %v1140_v20 = vadd.f32 %v3474_v13, %v1112_v35  ;;  %v1141_v50 = vadd.f32 %v1137_v14, %v1113_v53  ;;  %v3475_v19 = vld [vmem:[#allocation29_spill] sm:$0xff]  ;;  %v876_v6 = vrot.slane %v629_v2, %v3476_v42 }
 0x318   : > { %v1172_v43 = vrot.slane %v629_v2, %v3475_v19  ;;  %v1176_v31 = vrot.slane %v630_v10, %v3475_v19  ;;  %v880_v38 = vrot.slane %v630_v10, %v3476_v42  ;;  %v1080_v34 = vrot.slane %v629_v2, %v3477_v3 }
 0x319   : > { %1473 = vrot.lane.b32.xlu0 %v1468_v52, %s2035_s5  ;;  %v1149_v36 = vadd.f32 %v1147_v0, %v1140_v20  ;;  %v1150_v59 = vadd.f32 %v1148_v61, %v1141_v50  ;;  %v1084_v56 = vrot.slane %v630_v10, %v3477_v3  ;;  %v978_v51 = vrot.slane %v629_v2, %v3478_v9 }
 0x31a   : > { %v982_v32 = vrot.slane %v630_v10, %v3478_v9  ;;  %v1276_v7 = vrot.slane %v629_v2, %v3479_v60  ;;  %v1280_v62 = vrot.slane %v630_v10, %v3479_v60  ;;  %v1380_v18 = vrot.slane %v629_v2, %v3480_v25 }
 0x31b   : > { %v1158_v47 = vadd.f32 %v1156_v55, %v1149_v36  ;;  %v1159_v46 = vadd.f32 %v1157_v58, %v1150_v59  ;;  %v1384_v39 = vrot.slane %v630_v10, %v3480_v25  ;;  %v1484_v54 = vrot.slane %v629_v2, %v2586_v49 }
 0x31c   : > { %v1488_v26 = vrot.slane %v630_v10, %v2586_v49 }
 0x31d   : > { %v1167_v21 = vadd.f32 %v1165_v15, %v1158_v47  ;;  %v1168_v1 = vadd.f32 %v1166_v17, %v1159_v46 }
 0x31f   : > { %v1177_v50 = vmul.f32 %v1172_v43, %v1167_v21  ;;  %v1178_v61 = vmul.f32 %v1176_v31, %v1168_v1 }
 0x36c   : > { %v863_v48 = vpop.permute.xlu1 %862  ;;  %v867_v29 = vpop.permute.xlu0 %866 }
 0x36d   : > { %v869_v30 = vsel %vm868_vm9, %v867_v29, %v863_v48  ;;  %v872_v24 = vsel %vm868_vm9, %v863_v48, %v867_v29 }
 0x36e   : > { %v881_v53 = vmul.f32 %v876_v6, %v872_v24  ;;  %v882_v37 = vmul.f32 %v880_v38, %v869_v30 }
 0x370   : > { %v1067_v41 = vpop.permute.xlu1 %1066  ;;  %v1071_v8 = vpop.permute.xlu0 %1070 }
 0x371   : > { %v1073_v5 = vsel %vm1072_vm10, %v1071_v8, %v1067_v41  ;;  %v1076_v44 = vsel %vm1072_vm10, %v1067_v41, %v1071_v8 }
 0x372   : > { %v1085_v4 = vmul.f32 %v1080_v34, %v1076_v44  ;;  %v1086_v57 = vmul.f32 %v1084_v56, %v1073_v5  ;;  %v1892_v5 = vld [vmem:[%s3481_s6 + $0x10] sm:$0xff] }
 0x373   : > { %v3485_v44 = vld [vmem:[#allocation25_spill] sm:$0xff] }
 0x374   : > { %v1087_v36 = vadd.f32 %v1085_v4, %v881_v53  ;;  %v1088_v55 = vadd.f32 %v1086_v57, %v882_v37  ;;  %v1525_v25 = vmul.f32 %v1892_v5, %v3485_v44  ;;  %v1896_v4 = vld [vmem:[%s3481_s6 + $0x28] sm:$0xff] }
 0x377   : > { %v965_v63 = vpop.permute.xlu1 %964 }
 0x379   : > { %v969_v40 = vpop.permute.xlu0 %968 }
 0x37a   : > { %v971_v27 = vsel %vm970_vm11, %v969_v40, %v965_v63  ;;  %v974_v22 = vsel %vm970_vm11, %v965_v63, %v969_v40 }
 0x37b   : > { %v983_v35 = vmul.f32 %v978_v51, %v974_v22  ;;  %v984_v13 = vmul.f32 %v982_v32, %v971_v27  ;;  %v1890_v51 = vld [vmem:[%s3481_s6] sm:$0xff]  ;;  %v3486_v27 = vld [vmem:[#allocation26_spill] sm:$0xff] }
 0x37c   : > { %v1264_v33 = vpop.permute.xlu1 %1263  ;;  %v3484_v32 = vld [vmem:[#allocation24_spill] sm:$0xff]  ;;  %v1528_v57 = vmul.f32 %v1896_v4, %v3486_v27 }
 0x37d   : > { %v1179_v17 = vadd.f32 %v1177_v50, %v983_v35  ;;  %v1180_v49 = vadd.f32 %v1178_v61, %v984_v13  ;;  %v1523_v60 = vmul.f32 %v1890_v51, %v3484_v32 }
 0x380   : > { %v1266_v11 = vpop.permute.xlu0 %1265 }
 0x381   : > { %v1368_v12 = vpop.permute.xlu1 %1367  ;;  %v1268_v45 = vsel %vm1267_vm12, %v1264_v33, %v1266_v11  ;;  %v1272_v16 = vsel %vm1267_vm12, %v1266_v11, %v1264_v33 }
 0x382   : > { %v1281_v23 = vmul.f32 %v1276_v7, %v1268_v45  ;;  %v1282_v20 = vmul.f32 %v1280_v62, %v1272_v16  ;;  %v1891_v7 = vld [vmem:[%s3481_s6 + $0x8] sm:$0xff]  ;;  %v1895_v45 = vld [vmem:[%s3481_s6 + $0x18] sm:$0xff] }
 0x383   : > { %v1524_v62 = vmul.f32 %v1891_v7, %v3484_v32  ;;  %v1526_v16 = vmul.f32 %v1895_v45, %v3485_v44 }
 0x384   : > { %v1370_v28 = vpop.permute.xlu0 %1369  ;;  %v1283_v48 = vadd.f32 %v1281_v23, %v1087_v36  ;;  %v1284_v29 = vadd.f32 %v1282_v20, %v1088_v55 }
 0x385   : > { %v1372_v14 = vsel %vm1371_vm13, %v1368_v12, %v1370_v28  ;;  %v1376_v52 = vsel %vm1371_vm13, %v1370_v28, %v1368_v12  ;;  %v3487_v28 = vld [vmem:[#allocation27_spill] sm:$0xff] }
 0x386   : > { %v1472_v0 = vpop.permute.xlu1 %1471  ;;  %v1385_v15 = vmul.f32 %v1380_v18, %v1372_v14  ;;  %v1386_v59 = vmul.f32 %v1384_v39, %v1376_v52  ;;  %v1893_v18 = vld [vmem:[%s3481_s6 + $0x20] sm:$0xff]  ;;  %v1894_v39 = vld [vmem:[%s3481_s6 + $0x30] sm:$0xff] }
 0x387   : > { %v1527_v22 = vmul.f32 %v1893_v18, %v3486_v27  ;;  %v1529_v30 = vmul.f32 %v1894_v39, %v3487_v28 }
 0x388   : > { %v1387_v63 = vadd.f32 %v1385_v15, %v1179_v17  ;;  %v1388_v40 = vadd.f32 %v1386_v59, %v1180_v49 }
 0x38b   : > { %v1474_v58 = vpop.permute.xlu0 %1473 }
 0x38c   : > { %v1476_v47 = vsel %vm1475_vm14, %v1472_v0, %v1474_v58  ;;  %v1480_v46 = vsel %vm1475_vm14, %v1474_v58, %v1472_v0 }
 0x38d   : > { %v1489_v41 = vmul.f32 %v1484_v54, %v1476_v47  ;;  %v1490_v8 = vmul.f32 %v1488_v26, %v1480_v46  ;;  %v1897_v54 = vld [vmem:[%s3481_s6 + $0x38] sm:$0xff] }
 0x38e   : > { %v1530_v26 = vmul.f32 %v1897_v54, %v3487_v28 }
 0x38f   : > { %v1491_v2 = vadd.f32 %v1489_v41, %v1283_v48  ;;  %v1492_v21 = vadd.f32 %v1490_v8, %v1284_v29 }
 0x391   : > { %v1493_v1 = vadd.f32 %v1491_v2, %v1387_v63  ;;  %v1494_v10 = vadd.f32 %v1492_v21, %v1388_v40 }
 0x393   : > { %v1497_v33 = vrot.slane %v1493_v1, 1  ;;  %v1498_v19 = vrot.slane %v1494_v10, 1 }
 0x395   : > { %v1501_v43 = vadd.f32 %v1497_v33, %v1493_v1  ;;  %v1502_v31 = vadd.f32 %v1498_v19, %v1494_v10 }
 0x397   : > { %v1766_v11 = vmul.f32 -1.442695, %v1501_v43  ;;  %v1767_v6 = vmul.f32 -1.442695, %v1502_v31 }
 0x399   : > { %1882 = vpow2.f32 %v1766_v11 }
 0x39a   : > { %1884 = vpow2.f32 %v1767_v6 }
 0x3a3   : > { %v1883_v38 = vpop.eup %1882 }
 0x3a4   : > { %v1885_v3 = vpop.eup %1884  ;;  %v1509_v34 = vadd.f32 1.0, %v1883_v38 }
 0x3a5   : > { %v1510_v56 = vadd.f32 1.0, %v1885_v3 }
 0x3a6   : > { %1886 = vrcp.f32 %v1509_v34 }
 0x3a7   : > { %1888 = vrcp.f32 %v1510_v56 }
 0x3b0   : > { %v1887_v9 = vpop.eup %1886 }
 0x3b1   : > { %v1889_v12 = vpop.eup %1888  ;;  %v1534_v24 = vrot.slane %v1887_v9, %v3476_v42 }
 0x3b2   : > { %v1538_v35 = vrot.slane %v1889_v12, %v3476_v42 }
 0x3b3   : > { %v1539_v13 = vmul.f32 %v1534_v24, %v1523_v60  ;;  %v1541_v14 = vmul.f32 %v1534_v24, %v1525_v25  ;;  %v1543_v52 = vmul.f32 %v1534_v24, %v1527_v22  ;;  %v1545_v53 = vmul.f32 %v1534_v24, %v1529_v30 }
 0x3b4   : > { %v1540_v37 = vmul.f32 %v1538_v35, %v1524_v62  ;;  %v1542_v23 = vmul.f32 %v1538_v35, %v1526_v16  ;;  %v1544_v20 = vmul.f32 %v1538_v35, %v1528_v57  ;;  %v1546_v0 = vmul.f32 %v1538_v35, %v1530_v26 }
 0x3b5   : > { %1547 = vst [vmem:[%s283_s7] sm:$0xff] %v1539_v13  ;;  %1549 = vst [vmem:[%s283_s7 + $0x10] sm:$0xff] %v1541_v14 }
 0x3b6   : > { %1551 = vst [vmem:[%s283_s7 + $0x20] sm:$0xff] %v1543_v52  ;;  %1553 = vst [vmem:[%s283_s7 + $0x30] sm:$0xff] %v1545_v53 }
 0x3b7   : > { %1548 = vst [vmem:[%s283_s7 + $0x8] sm:$0xff] %v1540_v37  ;;  %1550 = vst [vmem:[%s283_s7 + $0x18] sm:$0xff] %v1542_v23 }
 0x3b8   : > { %1552 = vst [vmem:[%s283_s7 + $0x28] sm:$0xff] %v1544_v20  ;;  %1554 = vst [vmem:[%s283_s7 + $0x38] sm:$0xff] %v1546_v0 }
 0x3b9   : > { %1956 = shalt.err (!%p1953_p11)
}
 0x3ba   : > { %s1957_s19 = scalar_lea.hbm %s3276_s18, 1024  ;;  %s1961_s0 = scalar_lea.hbm %s3489_s15, 2048 }
 0x3bb   : > { %p1958_p0 = scmp.ne.s32.totalorder %s3276_s18, %s1957_s19  ;;  %p1962_p6 = scmp.lt.u32.totalorder %s3276_s18, %s3489_s15 }
 0x3bc   : > { %p1963_p3 = scmp.lt.u32.totalorder %s1961_s0, %s1957_s19  ;;  %p1965_p5 = scmp.lt.u32.totalorder %s1957_s19, %s3276_s18 }
 0x3bd   : > { %p1959_p2 = pnand %p1958_p0, %p3491_p12 }
 0x3be   : > { %p1964_p13 = por %p1963_p3, %p1962_p6 }
 0x3bf   : > { %p1960_p7 = pneg %p1959_p2 }
 0x3c0   : > { %p1966_p8 = por %p1965_p5, %p1964_p13 }
 0x3c2   : > { %p1967_p9 = pnand %p1966_p8, %p1960_p7 }
 0x3c4   : > { %1970 = shalt.err (!%p1967_p9)
}
 0x3c5   : > { %s2037_s3 = smov 256  }
 0x3c6   : > { %1781 = dma.vmem_to_hbm [thread:$0]  (%p3491_p12), %s3278_s12, 1024, %s3276_s18, %s1556_s28, %s2037_s3, %s2037_s3, %s2031_s21  }
 0x3c7 PF: > { %s3492_s5 = sld [smem:[#allocation13_spill]]  ;;  %s3493_s2 = sld [smem:[#allocation21_spill]] }
 0x3c8   : > { %s3494_s30 = sld [smem:[#allocation16_spill]] }
 0x3cd   : > { %s1584_s9 = sand.u32 1, %s3492_s5   ;;  %p3495_p10 = scmp.ne.s32.totalorder %s3493_s2, 0 }
 0x3ce   : > { %p3496_p1 = scmp.ge.s32.totalorder %s3494_s30, 2  ;;  %s1585_s23 = scalar_lea.sflag [#allocation6], %s1584_s9 }
 0x3d0   : > { %p1792_p4 = pnand %p3496_p1, %p3495_p10 }
 0x3d2   : > { %1996 = dma.done.wait (!%p1792_p4), %s1585_s23, 1024  }
 0x3d3   : > { %1998 = vsyncadd (!%p1792_p4), %s1585_s23, 4294966272  ;;  %s3497_s24 = sld [smem:[#allocation18_spill]]  ;;  %s3498_s21 = sld [smem:[#allocation14_spill]] }
 0x3d4   : > { %s3499_s22 = sld [smem:[#allocation15_spill]]  ;;  %s3500_s23 = sld [smem:[#allocation19_spill]] }
 0x3d9   : > { %p20_p11 = scmp.ge.s32.totalorder %s3497_s24, 4  }
 0x3db   :  { %22 = sbr.rel (!%p20_p11) target bundleno = 13 (0xd), region = 95 }
 0x3e2   :  { %1590 = vsyncpa [#allocation5], 1 }
 0x3e3   :  { %1592 = vsyncpa [#allocation5 + $0x1], 1 }
 0x3e4   :  { %1593 = vsyncpa [#allocation6], 1 }
 0x3e5   :  { %1595 = vsyncpa [#allocation6 + $0x1], 1 }
 0x3e6   :  { %1596 = vsyncpa [#allocation7], 1 }
 0x3e7   :  { %1598 = vsyncpa [#allocation7 + $0x1], 1 }

</bundles_post_ra>
